<compile_context>
chip_gen: v5e
topology: v5e:2x2
jax: 0.10.0
libtpu: 0.0.40
codegen_flags: <defaults>
</compile_context>

<pallas_src>
import jax
import jax.numpy as jnp
from jax.experimental import pallas as pl
from jax.experimental.pallas import tpu as pltpu


def _ceil_to(n, m):
    return ((n + m - 1) // m) * m


# ---------------- Pallas kernels ----------------

def _conv_relu_pool_kernel(p00_ref, p01_ref, p10_ref, p11_ref, w_ref, b_ref, o_ref):
    # Each p*_ref holds, for a tile of batch-folded pooled output positions,
    # the im2col patch matrix at pooling-window offset (di, dj): (TM, K) bf16.
    # pool(relu(conv+b)) == relu(max_offsets(patches @ W) + b)
    # (ReLU is monotone and the shared bias commutes with the max).
    w = w_ref[...]
    y = jnp.dot(p00_ref[...], w, preferred_element_type=jnp.float32)
    y = jnp.maximum(y, jnp.dot(p01_ref[...], w, preferred_element_type=jnp.float32))
    y = jnp.maximum(y, jnp.dot(p10_ref[...], w, preferred_element_type=jnp.float32))
    y = jnp.maximum(y, jnp.dot(p11_ref[...], w, preferred_element_type=jnp.float32))
    o_ref[...] = jnp.maximum(y + b_ref[...], 0.0).astype(o_ref.dtype)


def conv_relu_pool(patches4, w, b, rows_per_img, batch, target_rows=1024):
    # patches4: 4 tensors (B*rows_per_img, K) bf16; w: (K, C) bf16; b: (1, C) f32.
    R, K = patches4[0].shape
    C = w.shape[1]
    # Row tile = whole images per step, ~target_rows rows, divides the batch.
    # Tiles stay far below the 16 MiB v5e scoped-VMEM default.
    ipt = max(1, min(target_rows // rows_per_img, batch))
    while batch % ipt:
        ipt -= 1
    tm = ipt * rows_per_img
    grid = (R // tm,)
    p_spec = pl.BlockSpec((tm, K), lambda i: (i, 0))
    cost = pl.CostEstimate(
        flops=2 * 4 * R * K * C,
        transcendentals=0,
        bytes_accessed=4 * R * K * 2 + K * C * 2 + C * 4 + R * C * 2,
    )
    return pl.pallas_call(
        _conv_relu_pool_kernel,
        out_shape=jax.ShapeDtypeStruct((R, C), jnp.bfloat16),
        grid=grid,
        in_specs=[p_spec, p_spec, p_spec, p_spec,
                  pl.BlockSpec((K, C), lambda i: (0, 0)),
                  pl.BlockSpec((1, C), lambda i: (0, 0))],
        out_specs=pl.BlockSpec((tm, C), lambda i: (i, 0)),
        compiler_params=pltpu.CompilerParams(dimension_semantics=("parallel",)),
        cost_estimate=cost,
    )(*patches4, w, b)


def _fc3_kernel(x_ref, w1_ref, b1_ref, w2_ref, b2_ref, w3_ref, b3_ref, o_ref):
    h = jnp.dot(x_ref[...], w1_ref[...], preferred_element_type=jnp.float32)
    h = jnp.maximum(h + b1_ref[...], 0.0).astype(jnp.bfloat16)
    h = jnp.dot(h, w2_ref[...], preferred_element_type=jnp.float32)
    h = jnp.maximum(h + b2_ref[...], 0.0).astype(jnp.bfloat16)
    h = jnp.dot(h, w3_ref[...], preferred_element_type=jnp.float32)
    o_ref[...] = h + b3_ref[...]


def fc3(x, w1, b1, w2, b2, w3, b3):
    # x: (Rb, 400) bf16 with Rb a multiple of 16; weights bf16, biases f32 (1, N).
    Rb, K = x.shape
    N = w3.shape[1]
    tb = min(256, Rb)
    while Rb % tb:
        tb -= 16
    grid = (Rb // tb,)
    full = lambda a: pl.BlockSpec(a.shape, lambda i: (0,) * a.ndim)
    mm = (w1.shape[0] * w1.shape[1] + w2.shape[0] * w2.shape[1]
          + w3.shape[0] * w3.shape[1])
    cost = pl.CostEstimate(
        flops=2 * Rb * mm,
        transcendentals=0,
        bytes_accessed=Rb * K * 2 + mm * 2 + Rb * N * 4,
    )
    return pl.pallas_call(
        _fc3_kernel,
        out_shape=jax.ShapeDtypeStruct((Rb, N), jnp.float32),
        grid=grid,
        in_specs=[pl.BlockSpec((tb, K), lambda i: (i, 0)),
                  full(w1), full(b1), full(w2), full(b2), full(w3), full(b3)],
        out_specs=pl.BlockSpec((tb, N), lambda i: (i, 0)),
        compiler_params=pltpu.CompilerParams(dimension_semantics=("parallel",)),
        cost_estimate=cost,
    )(x, w1, b1, w2, b2, w3, b3)


# ---------------- wrapper-side glue ----------------

def _pooled_patches(x, kh, kw, rows_pad):
    """x: (B, H, W, C) channel-last.  Returns 4 batch-folded patch matrices,
    one per 2x2 pooling-window offset, each (B*rows_pad, kh*kw*C) bf16, with
    the per-image pooled positions zero-padded from PH*PW up to rows_pad (a
    multiple of 16) so blocks stay sublane-aligned for any batch size.
    Columns are flattened in (kh, kw, C) order to match the prepared conv
    weights.  Built directly from x with strided slices -- no full
    (B, OH, OW, K) im2col intermediate hits HBM."""
    B, H, W, C = x.shape
    OH, OW = H - kh + 1, W - kw + 1
    PH, PW = OH // 2, OW // 2
    outs = []
    for di in (0, 1):
        for dj in (0, 1):
            cols = [
                x[:, di + ki:di + ki + 2 * PH - 1:2,
                     dj + kj:dj + kj + 2 * PW - 1:2, :]
                for ki in range(kh) for kj in range(kw)
            ]
            p = jnp.concatenate(cols, axis=-1)                # (B, PH, PW, kh*kw*C)
            p = p.reshape(B, PH * PW, kh * kw * C)
            p = jnp.pad(p, ((0, 0), (0, rows_pad - PH * PW), (0, 0)))
            outs.append(p.reshape(B * rows_pad, kh * kw * C).astype(jnp.bfloat16))
    return outs


def prepare_params(p):
    """One-time conversion of PyTorch-layout params into kernel-ready form:
    conv weights -> (kh*kw*Cin, Cout) bf16; fc weights transposed to (in, out)
    bf16 with fc1's input dim permuted from PyTorch's (C,H,W) flatten order to
    the kernels' (H,W,C) order; biases kept f32 as (1, N) rows."""
    c1w = p["conv1_w"].transpose(2, 3, 1, 0).reshape(75, 6)      # (kh,kw,Cin,Cout)
    c2w = p["conv2_w"].transpose(2, 3, 1, 0).reshape(150, 16)
    f1w = p["fc1_w"].reshape(120, 16, 5, 5).transpose(2, 3, 1, 0).reshape(400, 120)
    f2w = p["fc2_w"].T                                           # (120, 84)
    f3w = p["fc3_w"].T                                           # (84, 10)
    bf = lambda a: a.astype(jnp.bfloat16)
    row = lambda a: a.reshape(1, -1).astype(jnp.float32)
    return {
        "c1_w": bf(c1w), "c1_b": row(p["conv1_b"]),
        "c2_w": bf(c2w), "c2_b": row(p["conv2_b"]),
        "f1_w": bf(f1w), "f1_b": row(p["fc1_b"]),
        "f2_w": bf(f2w), "f2_b": row(p["fc2_b"]),
        "f3_w": bf(f3w), "f3_b": row(p["fc3_b"]),
    }


def net_forward(x, prep):
    # x: (B, 3, 32, 32) NCHW f32, exactly like the PyTorch module's input.
    B = x.shape[0]
    x = x.transpose(0, 2, 3, 1).astype(jnp.bfloat16)             # NHWC + bf16 once

    rows1 = _ceil_to(14 * 14, 16)                                # 196 -> 208
    a1 = conv_relu_pool(_pooled_patches(x, 5, 5, rows1),
                        prep["c1_w"], prep["c1_b"], rows1, B)
    a1 = a1.reshape(B, rows1, 6)[:, :14 * 14].reshape(B, 14, 14, 6)

    rows2 = _ceil_to(5 * 5, 16)                                  # 25 -> 32
    a2 = conv_relu_pool(_pooled_patches(a1, 5, 5, rows2),
                        prep["c2_w"], prep["c2_b"], rows2, B)
    feat = a2.reshape(B, rows2, 16)[:, :25].reshape(B, 400)      # (h,w,c) flatten

    rb = _ceil_to(B, 16)
    feat = jnp.pad(feat, ((0, rb - B), (0, 0)))
    out = fc3(feat, prep["f1_w"], prep["f1_b"], prep["f2_w"], prep["f2_b"],
              prep["f3_w"], prep["f3_b"])
    return out[:B]


# ---------------- params + reference ----------------

def init_params(key):
    # Deterministic init mimicking PyTorch's default U(-1/sqrt(fan_in), +1/sqrt(fan_in)).
    def u(k, shape, fan_in):
        bound = 1.0 / float(fan_in) ** 0.5
        return jax.random.uniform(k, shape, jnp.float32, -bound, bound)

    ks = jax.random.split(key, 10)
    return {
        "conv1_w": u(ks[0], (6, 3, 5, 5), 3 * 5 * 5),
        "conv1_b": u(ks[1], (6,), 3 * 5 * 5),
        "conv2_w": u(ks[2], (16, 6, 5, 5), 6 * 5 * 5),
        "conv2_b": u(ks[3], (16,), 6 * 5 * 5),
        "fc1_w": u(ks[4], (120, 400), 400),   # PyTorch Linear weight layout (out, in)
        "fc1_b": u(ks[5], (120,), 400),
        "fc2_w": u(ks[6], (84, 120), 120),
        "fc2_b": u(ks[7], (84,), 120),
        "fc3_w": u(ks[8], (10, 84), 84),
        "fc3_b": u(ks[9], (10,), 84),
    }


def reference_forward(x, p):
    # Pure-JAX f32 reference with PyTorch layouts/semantics.
    dn = ("NCHW", "OIHW", "NCHW")
    y = jax.lax.conv_general_dilated(x, p["conv1_w"], (1, 1), "VALID", dimension_numbers=dn)
    y = jax.nn.relu(y + p["conv1_b"][None, :, None, None])
    y = jax.lax.reduce_window(y, -jnp.inf, jax.lax.max, (1, 1, 2, 2), (1, 1, 2, 2), "VALID")
    y = jax.lax.conv_general_dilated(y, p["conv2_w"], (1, 1), "VALID", dimension_numbers=dn)
    y = jax.nn.relu(y + p["conv2_b"][None, :, None, None])
    y = jax.lax.reduce_window(y, -jnp.inf, jax.lax.max, (1, 1, 2, 2), (1, 1, 2, 2), "VALID")
    y = y.reshape(y.shape[0], -1)
    y = jax.nn.relu(y @ p["fc1_w"].T + p["fc1_b"])
    y = jax.nn.relu(y @ p["fc2_w"].T + p["fc2_b"])
    return y @ p["fc3_w"].T + p["fc3_b"]


if __name__ == "__main__":
    key = jax.random.PRNGKey(0)
    kx, kp = jax.random.split(key)
    # 32x32 spatial input so the flatten is exactly 16*5*5, like the PyTorch module.
    x = jax.random.normal(kx, (2, 3, 32, 32), jnp.float32)
    params = init_params(kp)
    prep = prepare_params(params)            # one-time weight prep (transpose/permute/bf16)

    out = jax.jit(net_forward)(x, prep)
    out = jax.block_until_ready(out)
    assert out.shape == (2, 10) and out.dtype == jnp.float32

    ref = reference_forward(x, params)
    err = float(jnp.max(jnp.abs(out - ref)))
    # bf16 inputs/weights with f32 accumulation: observed error is O(1e-3) here.
    assert err < 5e-2, f"mismatch vs pure-JAX reference: {err}"
    print("KERNEL_OK")
</pallas_src>

<mosaic_0001>
module attributes {stable_mosaic.version = 11 : i64} {
  func.func @_conv_relu_pool_kernel(%arg0: i32, %arg1: memref<416x75xbf16, #tpu.memory_space<vmem>>, %arg2: memref<416x75xbf16, #tpu.memory_space<vmem>>, %arg3: memref<416x75xbf16, #tpu.memory_space<vmem>>, %arg4: memref<416x75xbf16, #tpu.memory_space<vmem>>, %arg5: memref<75x6xbf16, #tpu.memory_space<vmem>>, %arg6: memref<1x6xf32, #tpu.memory_space<vmem>>, %arg7: memref<416x6xbf16, #tpu.memory_space<vmem>>) attributes {dimension_semantics = [#tpu.dimension_semantics<parallel>], iteration_bounds = array<i64: 1>, scalar_prefetch = 0 : i64, scratch_operands = 0 : i64, tpu.core_type = #tpu.core_type<tc>, window_params = [{transform_indices = @transform_0, window_bounds = array<i64: 416, 75>}, {transform_indices = @transform_1, window_bounds = array<i64: 416, 75>}, {transform_indices = @transform_2, window_bounds = array<i64: 416, 75>}, {transform_indices = @transform_3, window_bounds = array<i64: 416, 75>}, {pipeline_mode = #tpu.pipeline_mode<synchronous>, transform_indices = @transform_4, window_bounds = array<i64: 75, 6>}, {pipeline_mode = #tpu.pipeline_mode<synchronous>, transform_indices = @transform_5, window_bounds = array<i64: 1, 6>}, {transform_indices = @transform_6, window_bounds = array<i64: 416, 6>}]} {
    %c0 = arith.constant 0 : index
    %c0_0 = arith.constant 0 : index
    %0 = vector.load %arg5[%c0, %c0_0] : memref<75x6xbf16, #tpu.memory_space<vmem>>, vector<75x6xbf16>
    %c0_1 = arith.constant 0 : index
    %c0_2 = arith.constant 0 : index
    %1 = vector.load %arg1[%c0_1, %c0_2] : memref<416x75xbf16, #tpu.memory_space<vmem>>, vector<416x75xbf16>
    %cst = arith.constant dense<0.000000e+00> : vector<416x6xf32>
    %2 = tpu.matmul %1, %0, %cst {dimension_numbers = #tpu.dot_dimension_numbers<[1], [0], [0], [1], [0, 0, 1, 1], [], []>} : vector<416x75xbf16>, vector<75x6xbf16>, vector<416x6xf32> -> vector<416x6xf32>
    %c0_3 = arith.constant 0 : index
    %c0_4 = arith.constant 0 : index
    %3 = vector.load %arg2[%c0_3, %c0_4] : memref<416x75xbf16, #tpu.memory_space<vmem>>, vector<416x75xbf16>
    %cst_5 = arith.constant dense<0.000000e+00> : vector<416x6xf32>
    %4 = tpu.matmul %3, %0, %cst_5 {dimension_numbers = #tpu.dot_dimension_numbers<[1], [0], [0], [1], [0, 0, 1, 1], [], []>} : vector<416x75xbf16>, vector<75x6xbf16>, vector<416x6xf32> -> vector<416x6xf32>
    %5 = arith.maximumf %2, %4 : vector<416x6xf32>
    %c0_6 = arith.constant 0 : index
    %c0_7 = arith.constant 0 : index
    %6 = vector.load %arg3[%c0_6, %c0_7] : memref<416x75xbf16, #tpu.memory_space<vmem>>, vector<416x75xbf16>
    %cst_8 = arith.constant dense<0.000000e+00> : vector<416x6xf32>
    %7 = tpu.matmul %6, %0, %cst_8 {dimension_numbers = #tpu.dot_dimension_numbers<[1], [0], [0], [1], [0, 0, 1, 1], [], []>} : vector<416x75xbf16>, vector<75x6xbf16>, vector<416x6xf32> -> vector<416x6xf32>
    %8 = arith.maximumf %5, %7 : vector<416x6xf32>
    %c0_9 = arith.constant 0 : index
    %c0_10 = arith.constant 0 : index
    %9 = vector.load %arg4[%c0_9, %c0_10] : memref<416x75xbf16, #tpu.memory_space<vmem>>, vector<416x75xbf16>
    %cst_11 = arith.constant dense<0.000000e+00> : vector<416x6xf32>
    %10 = tpu.matmul %9, %0, %cst_11 {dimension_numbers = #tpu.dot_dimension_numbers<[1], [0], [0], [1], [0, 0, 1, 1], [], []>} : vector<416x75xbf16>, vector<75x6xbf16>, vector<416x6xf32> -> vector<416x6xf32>
    %11 = arith.maximumf %8, %10 : vector<416x6xf32>
    %c0_12 = arith.constant 0 : index
    %c0_13 = arith.constant 0 : index
    %12 = vector.load %arg6[%c0_12, %c0_13] : memref<1x6xf32, #tpu.memory_space<vmem>>, vector<1x6xf32>
    %13 = vector.broadcast %12 : vector<1x6xf32> to vector<416x6xf32>
    %14 = arith.addf %11, %13 : vector<416x6xf32>
    %cst_14 = arith.constant 0.000000e+00 : f32
    %15 = vector.broadcast %cst_14 : f32 to vector<416x6xf32>
    %16 = arith.maximumf %14, %15 : vector<416x6xf32>
    %17 = arith.truncf %16 : vector<416x6xf32> to vector<416x6xbf16>
    %c0_15 = arith.constant 0 : index
    %c0_16 = arith.constant 0 : index
    %18 = vector.load %arg7[%c0_15, %c0_16] : memref<416x6xbf16, #tpu.memory_space<vmem>>, vector<416x6xbf16>
    tpu.vector_store %arg7[%c0_15, %c0_16], %17 {strides = array<i32>} : memref<416x6xbf16, #tpu.memory_space<vmem>>, vector<416x6xbf16>,
    return
  }
  func.func @transform_0(%arg0: i32) -> (i32, i32) {
    %c0_i32 = arith.constant 0 : i32
    %c0_i32_0 = arith.constant 0 : i32
    return %arg0, %c0_i32 : i32, i32
  }
  func.func @transform_1(%arg0: i32) -> (i32, i32) {
    %c0_i32 = arith.constant 0 : i32
    %c0_i32_0 = arith.constant 0 : i32
    return %arg0, %c0_i32 : i32, i32
  }
  func.func @transform_2(%arg0: i32) -> (i32, i32) {
    %c0_i32 = arith.constant 0 : i32
    %c0_i32_0 = arith.constant 0 : i32
    return %arg0, %c0_i32 : i32, i32
  }
  func.func @transform_3(%arg0: i32) -> (i32, i32) {
    %c0_i32 = arith.constant 0 : i32
    %c0_i32_0 = arith.constant 0 : i32
    return %arg0, %c0_i32 : i32, i32
  }
  func.func @transform_4(%arg0: i32) -> (i32, i32) {
    %c0_i32 = arith.constant 0 : i32
    %c0_i32_0 = arith.constant 0 : i32
    %c0_i32_1 = arith.constant 0 : i32
    return %c0_i32, %c0_i32_0 : i32, i32
  }
  func.func @transform_5(%arg0: i32) -> (i32, i32) {
    %c0_i32 = arith.constant 0 : i32
    %c0_i32_0 = arith.constant 0 : i32
    %c0_i32_1 = arith.constant 0 : i32
    return %c0_i32, %c0_i32_0 : i32, i32
  }
  func.func @transform_6(%arg0: i32) -> (i32, i32) {
    %c0_i32 = arith.constant 0 : i32
    %c0_i32_0 = arith.constant 0 : i32
    return %arg0, %c0_i32 : i32, i32
  }
}

module attributes {stable_mosaic.version = 11 : i64} {
  func.func @_conv_relu_pool_kernel(%arg0: i32, %arg1: memref<64x150xbf16, #tpu.memory_space<vmem>>, %arg2: memref<64x150xbf16, #tpu.memory_space<vmem>>, %arg3: memref<64x150xbf16, #tpu.memory_space<vmem>>, %arg4: memref<64x150xbf16, #tpu.memory_space<vmem>>, %arg5: memref<150x16xbf16, #tpu.memory_space<vmem>>, %arg6: memref<1x16xf32, #tpu.memory_space<vmem>>, %arg7: memref<64x16xbf16, #tpu.memory_space<vmem>>) attributes {dimension_semantics = [#tpu.dimension_semantics<parallel>], iteration_bounds = array<i64: 1>, scalar_prefetch = 0 : i64, scratch_operands = 0 : i64, tpu.core_type = #tpu.core_type<tc>, window_params = [{transform_indices = @transform_0, window_bounds = array<i64: 64, 150>}, {transform_indices = @transform_1, window_bounds = array<i64: 64, 150>}, {transform_indices = @transform_2, window_bounds = array<i64: 64, 150>}, {transform_indices = @transform_3, window_bounds = array<i64: 64, 150>}, {pipeline_mode = #tpu.pipeline_mode<synchronous>, transform_indices = @transform_4, window_bounds = array<i64: 150, 16>}, {pipeline_mode = #tpu.pipeline_mode<synchronous>, transform_indices = @transform_5, window_bounds = array<i64: 1, 16>}, {transform_indices = @transform_6, window_bounds = array<i64: 64, 16>}]} {
    %c0 = arith.constant 0 : index
    %c0_0 = arith.constant 0 : index
    %0 = vector.load %arg5[%c0, %c0_0] : memref<150x16xbf16, #tpu.memory_space<vmem>>, vector<150x16xbf16>
    %c0_1 = arith.constant 0 : index
    %c0_2 = arith.constant 0 : index
    %1 = vector.load %arg1[%c0_1, %c0_2] : memref<64x150xbf16, #tpu.memory_space<vmem>>, vector<64x150xbf16>
    %cst = arith.constant dense<0.000000e+00> : vector<64x16xf32>
    %2 = tpu.matmul %1, %0, %cst {dimension_numbers = #tpu.dot_dimension_numbers<[1], [0], [0], [1], [0, 0, 1, 1], [], []>} : vector<64x150xbf16>, vector<150x16xbf16>, vector<64x16xf32> -> vector<64x16xf32>
    %c0_3 = arith.constant 0 : index
    %c0_4 = arith.constant 0 : index
    %3 = vector.load %arg2[%c0_3, %c0_4] : memref<64x150xbf16, #tpu.memory_space<vmem>>, vector<64x150xbf16>
    %cst_5 = arith.constant dense<0.000000e+00> : vector<64x16xf32>
    %4 = tpu.matmul %3, %0, %cst_5 {dimension_numbers = #tpu.dot_dimension_numbers<[1], [0], [0], [1], [0, 0, 1, 1], [], []>} : vector<64x150xbf16>, vector<150x16xbf16>, vector<64x16xf32> -> vector<64x16xf32>
    %5 = arith.maximumf %2, %4 : vector<64x16xf32>
    %c0_6 = arith.constant 0 : index
    %c0_7 = arith.constant 0 : index
    %6 = vector.load %arg3[%c0_6, %c0_7] : memref<64x150xbf16, #tpu.memory_space<vmem>>, vector<64x150xbf16>
    %cst_8 = arith.constant dense<0.000000e+00> : vector<64x16xf32>
    %7 = tpu.matmul %6, %0, %cst_8 {dimension_numbers = #tpu.dot_dimension_numbers<[1], [0], [0], [1], [0, 0, 1, 1], [], []>} : vector<64x150xbf16>, vector<150x16xbf16>, vector<64x16xf32> -> vector<64x16xf32>
    %8 = arith.maximumf %5, %7 : vector<64x16xf32>
    %c0_9 = arith.constant 0 : index
    %c0_10 = arith.constant 0 : index
    %9 = vector.load %arg4[%c0_9, %c0_10] : memref<64x150xbf16, #tpu.memory_space<vmem>>, vector<64x150xbf16>
    %cst_11 = arith.constant dense<0.000000e+00> : vector<64x16xf32>
    %10 = tpu.matmul %9, %0, %cst_11 {dimension_numbers = #tpu.dot_dimension_numbers<[1], [0], [0], [1], [0, 0, 1, 1], [], []>} : vector<64x150xbf16>, vector<150x16xbf16>, vector<64x16xf32> -> vector<64x16xf32>
    %11 = arith.maximumf %8, %10 : vector<64x16xf32>
    %c0_12 = arith.constant 0 : index
    %c0_13 = arith.constant 0 : index
    %12 = vector.load %arg6[%c0_12, %c0_13] : memref<1x16xf32, #tpu.memory_space<vmem>>, vector<1x16xf32>
    %13 = vector.broadcast %12 : vector<1x16xf32> to vector<64x16xf32>
    %14 = arith.addf %11, %13 : vector<64x16xf32>
    %cst_14 = arith.constant 0.000000e+00 : f32
    %15 = vector.broadcast %cst_14 : f32 to vector<64x16xf32>
    %16 = arith.maximumf %14, %15 : vector<64x16xf32>
    %17 = arith.truncf %16 : vector<64x16xf32> to vector<64x16xbf16>
    %c0_15 = arith.constant 0 : index
    %c0_16 = arith.constant 0 : index
    %18 = vector.load %arg7[%c0_15, %c0_16] : memref<64x16xbf16, #tpu.memory_space<vmem>>, vector<64x16xbf16>
    tpu.vector_store %arg7[%c0_15, %c0_16], %17 {strides = array<i32>} : memref<64x16xbf16, #tpu.memory_space<vmem>>, vector<64x16xbf16>,
    return
  }
  func.func @transform_0(%arg0: i32) -> (i32, i32) {
    %c0_i32 = arith.constant 0 : i32
    %c0_i32_0 = arith.constant 0 : i32
    return %arg0, %c0_i32 : i32, i32
  }
  func.func @transform_1(%arg0: i32) -> (i32, i32) {
    %c0_i32 = arith.constant 0 : i32
    %c0_i32_0 = arith.constant 0 : i32
    return %arg0, %c0_i32 : i32, i32
  }
  func.func @transform_2(%arg0: i32) -> (i32, i32) {
    %c0_i32 = arith.constant 0 : i32
    %c0_i32_0 = arith.constant 0 : i32
    return %arg0, %c0_i32 : i32, i32
  }
  func.func @transform_3(%arg0: i32) -> (i32, i32) {
    %c0_i32 = arith.constant 0 : i32
    %c0_i32_0 = arith.constant 0 : i32
    return %arg0, %c0_i32 : i32, i32
  }
  func.func @transform_4(%arg0: i32) -> (i32, i32) {
    %c0_i32 = arith.constant 0 : i32
    %c0_i32_0 = arith.constant 0 : i32
    %c0_i32_1 = arith.constant 0 : i32
    return %c0_i32, %c0_i32_0 : i32, i32
  }
  func.func @transform_5(%arg0: i32) -> (i32, i32) {
    %c0_i32 = arith.constant 0 : i32
    %c0_i32_0 = arith.constant 0 : i32
    %c0_i32_1 = arith.constant 0 : i32
    return %c0_i32, %c0_i32_0 : i32, i32
  }
  func.func @transform_6(%arg0: i32) -> (i32, i32) {
    %c0_i32 = arith.constant 0 : i32
    %c0_i32_0 = arith.constant 0 : i32
    return %arg0, %c0_i32 : i32, i32
  }
}

module attributes {stable_mosaic.version = 11 : i64} {
  func.func @_fc3_kernel(%arg0: i32, %arg1: memref<16x400xbf16, #tpu.memory_space<vmem>>, %arg2: memref<400x120xbf16, #tpu.memory_space<vmem>>, %arg3: memref<1x120xf32, #tpu.memory_space<vmem>>, %arg4: memref<120x84xbf16, #tpu.memory_space<vmem>>, %arg5: memref<1x84xf32, #tpu.memory_space<vmem>>, %arg6: memref<84x10xbf16, #tpu.memory_space<vmem>>, %arg7: memref<1x10xf32, #tpu.memory_space<vmem>>, %arg8: memref<16x10xf32, #tpu.memory_space<vmem>>) attributes {dimension_semantics = [#tpu.dimension_semantics<parallel>], iteration_bounds = array<i64: 1>, scalar_prefetch = 0 : i64, scratch_operands = 0 : i64, tpu.core_type = #tpu.core_type<tc>, window_params = [{transform_indices = @transform_0, window_bounds = array<i64: 16, 400>}, {pipeline_mode = #tpu.pipeline_mode<synchronous>, transform_indices = @transform_1, window_bounds = array<i64: 400, 120>}, {pipeline_mode = #tpu.pipeline_mode<synchronous>, transform_indices = @transform_2, window_bounds = array<i64: 1, 120>}, {pipeline_mode = #tpu.pipeline_mode<synchronous>, transform_indices = @transform_3, window_bounds = array<i64: 120, 84>}, {pipeline_mode = #tpu.pipeline_mode<synchronous>, transform_indices = @transform_4, window_bounds = array<i64: 1, 84>}, {pipeline_mode = #tpu.pipeline_mode<synchronous>, transform_indices = @transform_5, window_bounds = array<i64: 84, 10>}, {pipeline_mode = #tpu.pipeline_mode<synchronous>, transform_indices = @transform_6, window_bounds = array<i64: 1, 10>}, {transform_indices = @transform_7, window_bounds = array<i64: 16, 10>}]} {
    %c0 = arith.constant 0 : index
    %c0_0 = arith.constant 0 : index
    %0 = vector.load %arg1[%c0, %c0_0] : memref<16x400xbf16, #tpu.memory_space<vmem>>, vector<16x400xbf16>
    %c0_1 = arith.constant 0 : index
    %c0_2 = arith.constant 0 : index
    %1 = vector.load %arg2[%c0_1, %c0_2] : memref<400x120xbf16, #tpu.memory_space<vmem>>, vector<400x120xbf16>
    %cst = arith.constant dense<0.000000e+00> : vector<16x120xf32>
    %2 = tpu.matmul %0, %1, %cst {dimension_numbers = #tpu.dot_dimension_numbers<[1], [0], [0], [1], [0, 0, 1, 1], [], []>} : vector<16x400xbf16>, vector<400x120xbf16>, vector<16x120xf32> -> vector<16x120xf32>
    %c0_3 = arith.constant 0 : index
    %c0_4 = arith.constant 0 : index
    %3 = vector.load %arg3[%c0_3, %c0_4] : memref<1x120xf32, #tpu.memory_space<vmem>>, vector<1x120xf32>
    %4 = vector.broadcast %3 : vector<1x120xf32> to vector<16x120xf32>
    %5 = arith.addf %2, %4 : vector<16x120xf32>
    %cst_5 = arith.constant 0.000000e+00 : f32
    %6 = vector.broadcast %cst_5 : f32 to vector<16x120xf32>
    %7 = arith.maximumf %5, %6 : vector<16x120xf32>
    %8 = arith.truncf %7 : vector<16x120xf32> to vector<16x120xbf16>
    %c0_6 = arith.constant 0 : index
    %c0_7 = arith.constant 0 : index
    %9 = vector.load %arg4[%c0_6, %c0_7] : memref<120x84xbf16, #tpu.memory_space<vmem>>, vector<120x84xbf16>
    %cst_8 = arith.constant dense<0.000000e+00> : vector<16x84xf32>
    %10 = tpu.matmul %8, %9, %cst_8 {dimension_numbers = #tpu.dot_dimension_numbers<[1], [0], [0], [1], [0, 0, 1, 1], [], []>} : vector<16x120xbf16>, vector<120x84xbf16>, vector<16x84xf32> -> vector<16x84xf32>
    %c0_9 = arith.constant 0 : index
    %c0_10 = arith.constant 0 : index
    %11 = vector.load %arg5[%c0_9, %c0_10] : memref<1x84xf32, #tpu.memory_space<vmem>>, vector<1x84xf32>
    %12 = vector.broadcast %11 : vector<1x84xf32> to vector<16x84xf32>
    %13 = arith.addf %10, %12 : vector<16x84xf32>
    %cst_11 = arith.constant 0.000000e+00 : f32
    %14 = vector.broadcast %cst_11 : f32 to vector<16x84xf32>
    %15 = arith.maximumf %13, %14 : vector<16x84xf32>
    %16 = arith.truncf %15 : vector<16x84xf32> to vector<16x84xbf16>
    %c0_12 = arith.constant 0 : index
    %c0_13 = arith.constant 0 : index
    %17 = vector.load %arg6[%c0_12, %c0_13] : memref<84x10xbf16, #tpu.memory_space<vmem>>, vector<84x10xbf16>
    %cst_14 = arith.constant dense<0.000000e+00> : vector<16x10xf32>
    %18 = tpu.matmul %16, %17, %cst_14 {dimension_numbers = #tpu.dot_dimension_numbers<[1], [0], [0], [1], [0, 0, 1, 1], [], []>} : vector<16x84xbf16>, vector<84x10xbf16>, vector<16x10xf32> -> vector<16x10xf32>
    %c0_15 = arith.constant 0 : index
    %c0_16 = arith.constant 0 : index
    %19 = vector.load %arg7[%c0_15, %c0_16] : memref<1x10xf32, #tpu.memory_space<vmem>>, vector<1x10xf32>
    %20 = vector.broadcast %19 : vector<1x10xf32> to vector<16x10xf32>
    %21 = arith.addf %18, %20 : vector<16x10xf32>
    %c0_17 = arith.constant 0 : index
    %c0_18 = arith.constant 0 : index
    %22 = vector.load %arg8[%c0_17, %c0_18] : memref<16x10xf32, #tpu.memory_space<vmem>>, vector<16x10xf32>
    tpu.vector_store %arg8[%c0_17, %c0_18], %21 {strides = array<i32>} : memref<16x10xf32, #tpu.memory_space<vmem>>, vector<16x10xf32>,
    return
  }
  func.func @transform_0(%arg0: i32) -> (i32, i32) {
    %c0_i32 = arith.constant 0 : i32
    %c0_i32_0 = arith.constant 0 : i32
    return %arg0, %c0_i32 : i32, i32
  }
  func.func @transform_1(%arg0: i32) -> (i32, i32) {
    %c0_i32 = arith.constant 0 : i32
    %c0_i32_0 = arith.constant 0 : i32
    %c0_i32_1 = arith.constant 0 : i32
    return %c0_i32, %c0_i32_0 : i32, i32
  }
  func.func @transform_2(%arg0: i32) -> (i32, i32) {
    %c0_i32 = arith.constant 0 : i32
    %c0_i32_0 = arith.constant 0 : i32
    %c0_i32_1 = arith.constant 0 : i32
    return %c0_i32, %c0_i32_0 : i32, i32
  }
  func.func @transform_3(%arg0: i32) -> (i32, i32) {
    %c0_i32 = arith.constant 0 : i32
    %c0_i32_0 = arith.constant 0 : i32
    %c0_i32_1 = arith.constant 0 : i32
    return %c0_i32, %c0_i32_0 : i32, i32
  }
  func.func @transform_4(%arg0: i32) -> (i32, i32) {
    %c0_i32 = arith.constant 0 : i32
    %c0_i32_0 = arith.constant 0 : i32
    %c0_i32_1 = arith.constant 0 : i32
    return %c0_i32, %c0_i32_0 : i32, i32
  }
  func.func @transform_5(%arg0: i32) -> (i32, i32) {
    %c0_i32 = arith.constant 0 : i32
    %c0_i32_0 = arith.constant 0 : i32
    %c0_i32_1 = arith.constant 0 : i32
    return %c0_i32, %c0_i32_0 : i32, i32
  }
  func.func @transform_6(%arg0: i32) -> (i32, i32) {
    %c0_i32 = arith.constant 0 : i32
    %c0_i32_0 = arith.constant 0 : i32
    %c0_i32_1 = arith.constant 0 : i32
    return %c0_i32, %c0_i32_0 : i32, i32
  }
  func.func @transform_7(%arg0: i32) -> (i32, i32) {
    %c0_i32 = arith.constant 0 : i32
    %c0_i32_0 = arith.constant 0 : i32
    return %arg0, %c0_i32 : i32, i32
  }
}

</mosaic_0001>

<bundles_post_ra>
// kernel: net_forward.3
= control target key start
LH: loop header
LB: loop body
LE: loop exit
PB: predicated region body
PF: predicated region fallthrough
CT: control target
= control target key end

     0   :  { %vm324_vm0 = vcmask 1044480   ;;  %vm325_vm1 = vcmask 1045504   ;;  %v2692_v2 = vmov 65535   ;;  %vm245_vm2 = vcmask 613376   ;;  %s3432_s4 = inlined_call_operand.vmem [shape: bf16[75,6], index: 4, kind: input, shape index: {}]   ;;  %s3433_s0 = inlined_call_operand.vmem [shape: bf16[416,75], index: 0, kind: input, shape index: {}]   ;;  %s3434_s1 = inlined_call_operand.vmem [shape: bf16[416,75], index: 1, kind: input, shape index: {}]   ;;  %s3435_s2 = inlined_call_operand.vmem [shape: bf16[416,75], index: 2, kind: input, shape index: {}]   ;;  %s3436_s3 = inlined_call_operand.vmem [shape: bf16[416,75], index: 3, kind: input, shape index: {}]   ;;  %s3437_s5 = inlined_call_operand.vmem [shape: f32[1,6], index: 5, kind: input, shape index: {}]   ;;  %s3438_s6 = inlined_call_operand.vmem [shape: bf16[416,6], index: 6, kind: output, shape index: {}]  }
   0x1   :  { %v2162_v0 = vld [vmem:[%s3432_s4 + $0x20] sm:$0xf]  ;;  %v2584_v1 = vld [vmem:[%s3432_s4 + $0x20] sm:$0x30]  ;;  %v326_v3 = vsel %vm324_vm0, 4294967295, %v2692_v2  ;;  %v2583_v7 = vld [vmem:[%s3432_s4 + $0x18] sm:$0xff] }
   0x2   :  { %v2163_v4 = vor.u32 %v2584_v1, %v2162_v0  ;;  %v327_v5 = vsel %vm325_vm1, %v326_v3, 0  ;;  %v2582_v8 = vld [vmem:[%s3432_s4 + $0x10] sm:$0xff]  ;;  %v2581_v9 = vld [vmem:[%s3432_s4 + $0x8] sm:$0xff]  ;;  %v2580_v10 = vld [vmem:[%s3432_s4] sm:$0xff]  ;;  %vm1983_vm3 = vcmask 44032  }
   0x3   :  { %v2585_v11 = vld [vmem:[%s3433_s0] sm:$0xff]  ;;  %v2586_v15 = vld [vmem:[%s3433_s0 + $0x8] sm:$0xff]  ;;  %v2587_v19 = vld [vmem:[%s3433_s0 + $0x10] sm:$0xff] }
   0x4   :  { %v329_v6 = vand.u32 %v2163_v4, %v327_v5  ;;  %v2611_v12 = vld [vmem:[%s3434_s1] sm:$0xff]  ;;  %v2612_v16 = vld [vmem:[%s3434_s1 + $0x8] sm:$0xff]  ;;  %v2613_v20 = vld [vmem:[%s3434_s1 + $0x10] sm:$0xff] }
   0x5   :  { %v2637_v13 = vld [vmem:[%s3435_s2] sm:$0xff]  ;;  %v2638_v17 = vld [vmem:[%s3435_s2 + $0x8] sm:$0xff]  ;;  %v2639_v21 = vld [vmem:[%s3435_s2 + $0x10] sm:$0xff] }
   0x6   :  { %334 = vmatpush.bf16.msra.mxu0 %v329_v6  ;;  %733 = vmatpush.bf16.msra.mxu1 %v329_v6  ;;  %v2663_v14 = vld [vmem:[%s3436_s3] sm:$0xff]  ;;  %v2664_v18 = vld [vmem:[%s3436_s3 + $0x8] sm:$0xff]  ;;  %v2665_v22 = vld [vmem:[%s3436_s3 + $0x10] sm:$0xff] }
   0x7   :  { %1184 = vmatpush.bf16.msra.mxu2 %v329_v6  ;;  %1635 = vmatpush.bf16.msra.mxu3 %v329_v6  ;;  %v2588_v23 = vld [vmem:[%s3433_s0 + $0x18] sm:$0xff]  ;;  %v2589_v27 = vld [vmem:[%s3433_s0 + $0x20] sm:$0xff]  ;;  %v2590_v31 = vld [vmem:[%s3433_s0 + $0x28] sm:$0xff] }
   0x8   :  { %v2614_v24 = vld [vmem:[%s3434_s1 + $0x18] sm:$0xff]  ;;  %v2615_v28 = vld [vmem:[%s3434_s1 + $0x20] sm:$0xff]  ;;  %v2616_v32 = vld [vmem:[%s3434_s1 + $0x28] sm:$0xff] }
   0x9   :  { %v2640_v25 = vld [vmem:[%s3435_s2 + $0x18] sm:$0xff]  ;;  %v2641_v29 = vld [vmem:[%s3435_s2 + $0x20] sm:$0xff]  ;;  %v2642_v33 = vld [vmem:[%s3435_s2 + $0x28] sm:$0xff] }
   0xa   :  { %335 = vmatpush.bf16.msra.mxu0 %v2583_v7  ;;  %734 = vmatpush.bf16.msra.mxu1 %v2583_v7  ;;  %v2666_v26 = vld [vmem:[%s3436_s3 + $0x18] sm:$0xff]  ;;  %v2667_v30 = vld [vmem:[%s3436_s3 + $0x20] sm:$0xff]  ;;  %v2668_v34 = vld [vmem:[%s3436_s3 + $0x28] sm:$0xff] }
   0xb   :  { %1185 = vmatpush.bf16.msra.mxu2 %v2583_v7  ;;  %1636 = vmatpush.bf16.msra.mxu3 %v2583_v7  ;;  %v2591_v35 = vld [vmem:[%s3433_s0 + $0x30] sm:$0xff]  ;;  %v2592_v39 = vld [vmem:[%s3433_s0 + $0x38] sm:$0xff]  ;;  %v2593_v43 = vld [vmem:[%s3433_s0 + $0x40] sm:$0xff] }
   0xc   :  { %v2617_v36 = vld [vmem:[%s3434_s1 + $0x30] sm:$0xff]  ;;  %v2618_v40 = vld [vmem:[%s3434_s1 + $0x38] sm:$0xff]  ;;  %v2619_v44 = vld [vmem:[%s3434_s1 + $0x40] sm:$0xff] }
   0xd   :  { %v2643_v37 = vld [vmem:[%s3435_s2 + $0x30] sm:$0xff]  ;;  %v2644_v41 = vld [vmem:[%s3435_s2 + $0x38] sm:$0xff]  ;;  %v2645_v47 = vld [vmem:[%s3435_s2 + $0x40] sm:$0xff] }
   0xe   :  { %336 = vmatpush.bf16.msra.mxu0 %v2582_v8  ;;  %735 = vmatpush.bf16.msra.mxu1 %v2582_v8  ;;  %v2669_v38 = vld [vmem:[%s3436_s3 + $0x30] sm:$0xff]  ;;  %v2670_v42 = vld [vmem:[%s3436_s3 + $0x38] sm:$0xff]  ;;  %v2671_v48 = vld [vmem:[%s3436_s3 + $0x40] sm:$0xff] }
   0xf   :  { %1186 = vmatpush.bf16.msra.mxu2 %v2582_v8  ;;  %1637 = vmatpush.bf16.msra.mxu3 %v2582_v8  ;;  %v2893_v53 = vld [vmem:[%s3437_s5] ss:$0 sm:$0xff]  ;;  %v2594_v62 = vld [vmem:[%s3433_s0 + $0x48] sm:$0xff] }
  0x10   :  { %v2620_v63 = vld [vmem:[%s3434_s1 + $0x48] sm:$0xff] }
  0x11   :  { %v2646_v4 = vld [vmem:[%s3435_s2 + $0x48] sm:$0xff] }
  0x12   :  { %337 = vmatpush.bf16.msra.mxu0 %v2581_v9  ;;  %736 = vmatpush.bf16.msra.mxu1 %v2581_v9  ;;  %v2672_v5 = vld [vmem:[%s3436_s3 + $0x48] sm:$0xff] }
  0x13   :  { %1187 = vmatpush.bf16.msra.mxu2 %v2581_v9  ;;  %1638 = vmatpush.bf16.msra.mxu3 %v2581_v9 }
  0x16   :  { %338 = vmatpush.bf16.msra.mxu0 %v2580_v10  ;;  %737 = vmatpush.bf16.msra.mxu1 %v2580_v10 }
  0x17   :  { %1188 = vmatpush.bf16.msra.mxu2 %v2580_v10  ;;  %1639 = vmatpush.bf16.msra.mxu3 %v2580_v10 }
  0x19   :  { %2164 = vmatmul.msk.bf16.vlgmr.msra.gmra.mxu0 %vm245_vm2, %v2585_v11  ;;  %2294 = vmatmul.msk.bf16.vlgmr.msra.gmra.mxu1 %vm245_vm2, %v2611_v12 }
  0x1a   :  { %2424 = vmatmul.msk.bf16.vlgmr.msra.gmra.mxu2 %vm245_vm2, %v2637_v13  ;;  %2554 = vmatmul.msk.bf16.vlgmr.msra.gmra.mxu3 %vm245_vm2, %v2663_v14 }
  0x29   :  { %2165 = vmatmul.msk.bf16.gmra.mxu0 %vm245_vm2, %v2586_v15  ;;  %2295 = vmatmul.msk.bf16.gmra.mxu1 %vm245_vm2, %v2612_v16 }
  0x2a   :  { %2425 = vmatmul.msk.bf16.gmra.mxu2 %vm245_vm2, %v2638_v17  ;;  %2555 = vmatmul.msk.bf16.gmra.mxu3 %vm245_vm2, %v2664_v18 }
  0x39   :  { %2166 = vmatmul.msk.bf16.gmra.mxu0 %vm245_vm2, %v2587_v19  ;;  %2296 = vmatmul.msk.bf16.gmra.mxu1 %vm245_vm2, %v2613_v20 }
  0x3a   :  { %2426 = vmatmul.msk.bf16.gmra.mxu2 %vm245_vm2, %v2639_v21  ;;  %2556 = vmatmul.msk.bf16.gmra.mxu3 %vm245_vm2, %v2665_v22  ;;  %v2595_v22 = vld [vmem:[%s3433_s0 + $0x50] sm:$0xff] }
  0x49   :  { %2167 = vmatmul.msk.bf16.gmra.mxu0 %vm245_vm2, %v2588_v23  ;;  %2297 = vmatmul.msk.bf16.gmra.mxu1 %vm245_vm2, %v2614_v24  ;;  %v2621_v23 = vld [vmem:[%s3434_s1 + $0x50] sm:$0xff] }
  0x4a   :  { %2427 = vmatmul.msk.bf16.gmra.mxu2 %vm245_vm2, %v2640_v25  ;;  %2557 = vmatmul.msk.bf16.gmra.mxu3 %vm245_vm2, %v2666_v26 }
  0x59   :  { %2168 = vmatmul.msk.bf16.gmra.mxu0 %vm245_vm2, %v2589_v27  ;;  %2298 = vmatmul.msk.bf16.gmra.mxu1 %vm245_vm2, %v2615_v28  ;;  %v2647_v28 = vld [vmem:[%s3435_s2 + $0x50] sm:$0xff] }
  0x5a   :  { %2428 = vmatmul.msk.bf16.gmra.mxu2 %vm245_vm2, %v2641_v29  ;;  %2558 = vmatmul.msk.bf16.gmra.mxu3 %vm245_vm2, %v2667_v30  ;;  %v2673_v29 = vld [vmem:[%s3436_s3 + $0x50] sm:$0xff] }
  0x69   :  { %2169 = vmatmul.msk.bf16.gmra.mxu0 %vm245_vm2, %v2590_v31  ;;  %2299 = vmatmul.msk.bf16.gmra.mxu1 %vm245_vm2, %v2616_v32 }
  0x6a   :  { %2429 = vmatmul.msk.bf16.gmra.mxu2 %vm245_vm2, %v2642_v33  ;;  %2559 = vmatmul.msk.bf16.gmra.mxu3 %vm245_vm2, %v2668_v34 }
  0x79   :  { %2170 = vmatmul.msk.bf16.gmra.mxu0 %vm245_vm2, %v2591_v35  ;;  %2300 = vmatmul.msk.bf16.gmra.mxu1 %vm245_vm2, %v2617_v36 }
  0x7a   :  { %2430 = vmatmul.msk.bf16.gmra.mxu2 %vm245_vm2, %v2643_v37  ;;  %2560 = vmatmul.msk.bf16.gmra.mxu3 %vm245_vm2, %v2669_v38 }
  0x89   :  { %2171 = vmatmul.msk.bf16.gmra.mxu0 %vm245_vm2, %v2592_v39  ;;  %2301 = vmatmul.msk.bf16.gmra.mxu1 %vm245_vm2, %v2618_v40 }
  0x8a   :  { %2431 = vmatmul.msk.bf16.gmra.mxu2 %vm245_vm2, %v2644_v41  ;;  %2561 = vmatmul.msk.bf16.gmra.mxu3 %vm245_vm2, %v2670_v42 }
  0x96   :  { %v340_v45 = vpop.f32.mrf.mxu0  ;;  %v739_v46 = vpop.f32.mrf.mxu1 }
  0x97   :  { %v869_v49 = vmax.f32 %v340_v45, %v739_v46  ;;  %v2596_v46 = vld [vmem:[%s3433_s0 + $0x58] sm:$0xff] }
  0x99   :  { %2172 = vmatmul.msk.bf16.gmra.mxu0 %vm245_vm2, %v2593_v43  ;;  %2302 = vmatmul.msk.bf16.gmra.mxu1 %vm245_vm2, %v2619_v44 }
  0x9a   :  { %2432 = vmatmul.msk.bf16.gmra.mxu2 %vm245_vm2, %v2645_v47  ;;  %2562 = vmatmul.msk.bf16.gmra.mxu3 %vm245_vm2, %v2671_v48  ;;  %v2622_v47 = vld [vmem:[%s3434_s1 + $0x58] sm:$0xff] }
  0x9d   :  { %v1190_v50 = vpop.f32.mrf.mxu2  ;;  %v1641_v51 = vpop.f32.mrf.mxu3 }
  0x9e   :  { %v1320_v52 = vmax.f32 %v869_v49, %v1190_v50  ;;  %v342_v54 = vpop.f32.mrf.mxu0  ;;  %v741_v55 = vpop.f32.mrf.mxu1 }
  0x9f   :  { %v870_v59 = vmax.f32 %v342_v54, %v741_v55  ;;  %v2674_v54 = vld [vmem:[%s3436_s3 + $0x58] sm:$0xff] }
  0xa0   :  { %v1771_v56 = vmax.f32 %v1320_v52, %v1641_v51  ;;  %v2648_v52 = vld [vmem:[%s3435_s2 + $0x58] sm:$0xff] }
  0xa2   :  { %v1827_v57 = vadd.f32 %v2893_v53, %v1771_v56 }
  0xa4   :  { %v1879_v58 = vmax.f32 %v1827_v57, 0.0 }
  0xa5   :  { %v1192_v60 = vpop.f32.mrf.mxu2  ;;  %v1643_v61 = vpop.f32.mrf.mxu3 }
  0xa6   :  { %v1931_v0 = vpack.c.bf16 %v1879_v58, %v1879_v58  ;;  %v1321_v1 = vmax.f32 %v870_v59, %v1192_v60  ;;  %v345_v2 = vpop.f32.mrf.mxu0  ;;  %v744_v3 = vpop.f32.mrf.mxu1 }
  0xa7   :  { %v871_v8 = vmax.f32 %v345_v2, %v744_v3 }
  0xa8   :  { %1984 = vst.msk [vmem:[%s3438_s6] sm:$0xf] %vm1983_vm3, %v1931_v0  ;;  %v1772_v6 = vmax.f32 %v1321_v1, %v1643_v61 }
  0xa9   :  { %2173 = vmatmul.msk.bf16.gmra.mxu0 %vm245_vm2, %v2594_v62  ;;  %2303 = vmatmul.msk.bf16.gmra.mxu1 %vm245_vm2, %v2620_v63 }
  0xaa   :  { %v1828_v7 = vadd.f32 %v2893_v53, %v1772_v6  ;;  %2433 = vmatmul.msk.bf16.gmra.mxu2 %vm245_vm2, %v2646_v4  ;;  %2563 = vmatmul.msk.bf16.gmra.mxu3 %vm245_vm2, %v2672_v5 }
  0xac   :  { %v1880_v9 = vmax.f32 %v1828_v7, 0.0  ;;  %v2597_v7 = vld [vmem:[%s3433_s0 + $0x60] sm:$0xff] }
  0xad   :  { %v1195_v10 = vpop.f32.mrf.mxu2  ;;  %v1646_v11 = vpop.f32.mrf.mxu3 }
  0xae   :  { %v1932_v12 = vpack.c.bf16 %v1880_v9, %v1880_v9  ;;  %v1322_v13 = vmax.f32 %v871_v8, %v1195_v10  ;;  %v347_v14 = vpop.f32.mrf.mxu0  ;;  %v746_v15 = vpop.f32.mrf.mxu1  ;;  %v2623_v8 = vld [vmem:[%s3434_s1 + $0x60] sm:$0xff] }
  0xaf   :  { %v872_v19 = vmax.f32 %v347_v14, %v746_v15  ;;  %v2675_v14 = vld [vmem:[%s3436_s3 + $0x60] sm:$0xff] }
  0xb0   :  { %1985 = vst.msk [vmem:[%s3438_s6 + $0x4] sm:$0xf] %vm1983_vm3, %v1932_v12  ;;  %v1773_v16 = vmax.f32 %v1322_v13, %v1646_v11  ;;  %v2649_v13 = vld [vmem:[%s3435_s2 + $0x60] sm:$0xff] }
  0xb2   :  { %v1829_v17 = vadd.f32 %v2893_v53, %v1773_v16 }
  0xb4   :  { %v1881_v18 = vmax.f32 %v1829_v17, 0.0 }
  0xb5   :  { %v1197_v20 = vpop.f32.mrf.mxu2  ;;  %v1648_v21 = vpop.f32.mrf.mxu3 }
  0xb6   :  { %v1933_v24 = vpack.c.bf16 %v1881_v18, %v1881_v18  ;;  %v1323_v25 = vmax.f32 %v872_v19, %v1197_v20  ;;  %v350_v26 = vpop.f32.mrf.mxu0  ;;  %v749_v27 = vpop.f32.mrf.mxu1 }
  0xb7   :  { %v873_v32 = vmax.f32 %v350_v26, %v749_v27 }
  0xb8   :  { %1986 = vst.msk [vmem:[%s3438_s6 + $0x8] sm:$0xf] %vm1983_vm3, %v1933_v24  ;;  %v1774_v30 = vmax.f32 %v1323_v25, %v1648_v21 }
  0xb9   :  { %2174 = vmatmul.msk.bf16.gmra.mxu0 %vm245_vm2, %v2595_v22  ;;  %2304 = vmatmul.msk.bf16.gmra.mxu1 %vm245_vm2, %v2621_v23 }
  0xba   :  { %v1830_v31 = vadd.f32 %v2893_v53, %v1774_v30  ;;  %2434 = vmatmul.msk.bf16.gmra.mxu2 %vm245_vm2, %v2647_v28  ;;  %2564 = vmatmul.msk.bf16.gmra.mxu3 %vm245_vm2, %v2673_v29 }
  0xbc   :  { %v1882_v33 = vmax.f32 %v1830_v31, 0.0  ;;  %v2598_v31 = vld [vmem:[%s3433_s0 + $0x68] sm:$0xff] }
  0xbd   :  { %v1200_v34 = vpop.f32.mrf.mxu2  ;;  %v1651_v35 = vpop.f32.mrf.mxu3 }
  0xbe   :  { %v1934_v36 = vpack.c.bf16 %v1882_v33, %v1882_v33  ;;  %v1324_v37 = vmax.f32 %v873_v32, %v1200_v34  ;;  %v352_v38 = vpop.f32.mrf.mxu0  ;;  %v751_v39 = vpop.f32.mrf.mxu1  ;;  %v2624_v32 = vld [vmem:[%s3434_s1 + $0x68] sm:$0xff] }
  0xbf   :  { %v874_v43 = vmax.f32 %v352_v38, %v751_v39  ;;  %v2676_v38 = vld [vmem:[%s3436_s3 + $0x68] sm:$0xff] }
  0xc0   :  { %1987 = vst.msk [vmem:[%s3438_s6 + $0xc] sm:$0xf] %vm1983_vm3, %v1934_v36  ;;  %v1775_v40 = vmax.f32 %v1324_v37, %v1651_v35  ;;  %v2650_v37 = vld [vmem:[%s3435_s2 + $0x68] sm:$0xff] }
  0xc2   :  { %v1831_v41 = vadd.f32 %v2893_v53, %v1775_v40 }
  0xc4   :  { %v1883_v42 = vmax.f32 %v1831_v41, 0.0 }
  0xc5   :  { %v1202_v44 = vpop.f32.mrf.mxu2  ;;  %v1653_v45 = vpop.f32.mrf.mxu3 }
  0xc6   :  { %v1935_v48 = vpack.c.bf16 %v1883_v42, %v1883_v42  ;;  %v1325_v49 = vmax.f32 %v874_v43, %v1202_v44  ;;  %v355_v50 = vpop.f32.mrf.mxu0  ;;  %v754_v51 = vpop.f32.mrf.mxu1 }
  0xc7   :  { %v875_v57 = vmax.f32 %v355_v50, %v754_v51 }
  0xc8   :  { %1988 = vst.msk [vmem:[%s3438_s6 + $0x10] sm:$0xf] %vm1983_vm3, %v1935_v48  ;;  %v1776_v55 = vmax.f32 %v1325_v49, %v1653_v45 }
  0xc9   :  { %2175 = vmatmul.msk.bf16.gmra.mxu0 %vm245_vm2, %v2596_v46  ;;  %2305 = vmatmul.msk.bf16.gmra.mxu1 %vm245_vm2, %v2622_v47 }
  0xca   :  { %v1832_v56 = vadd.f32 %v2893_v53, %v1776_v55  ;;  %2435 = vmatmul.msk.bf16.gmra.mxu2 %vm245_vm2, %v2648_v52  ;;  %2565 = vmatmul.msk.bf16.gmra.mxu3 %vm245_vm2, %v2674_v54 }
  0xcc   :  { %v1884_v58 = vmax.f32 %v1832_v56, 0.0  ;;  %v2599_v56 = vld [vmem:[%s3433_s0 + $0x70] sm:$0xff] }
  0xcd   :  { %v1205_v59 = vpop.f32.mrf.mxu2  ;;  %v1656_v60 = vpop.f32.mrf.mxu3 }
  0xce   :  { %v1936_v61 = vpack.c.bf16 %v1884_v58, %v1884_v58  ;;  %v1326_v62 = vmax.f32 %v875_v57, %v1205_v59  ;;  %v357_v63 = vpop.f32.mrf.mxu0  ;;  %v756_v0 = vpop.f32.mrf.mxu1  ;;  %v2625_v57 = vld [vmem:[%s3434_s1 + $0x70] sm:$0xff] }
  0xcf   :  { %v876_v4 = vmax.f32 %v357_v63, %v756_v0  ;;  %v2677_v63 = vld [vmem:[%s3436_s3 + $0x70] sm:$0xff] }
  0xd0   :  { %1989 = vst.msk [vmem:[%s3438_s6 + $0x14] sm:$0xf] %vm1983_vm3, %v1936_v61  ;;  %v1777_v1 = vmax.f32 %v1326_v62, %v1656_v60  ;;  %v2651_v62 = vld [vmem:[%s3435_s2 + $0x70] sm:$0xff] }
  0xd2   :  { %v1833_v2 = vadd.f32 %v2893_v53, %v1777_v1 }
  0xd4   :  { %v1885_v3 = vmax.f32 %v1833_v2, 0.0 }
  0xd5   :  { %v1207_v5 = vpop.f32.mrf.mxu2  ;;  %v1658_v6 = vpop.f32.mrf.mxu3 }
  0xd6   :  { %v1937_v9 = vpack.c.bf16 %v1885_v3, %v1885_v3  ;;  %v1327_v10 = vmax.f32 %v876_v4, %v1207_v5  ;;  %v360_v11 = vpop.f32.mrf.mxu0  ;;  %v759_v12 = vpop.f32.mrf.mxu1 }
  0xd7   :  { %v877_v17 = vmax.f32 %v360_v11, %v759_v12 }
  0xd8   :  { %1990 = vst.msk [vmem:[%s3438_s6 + $0x18] sm:$0xf] %vm1983_vm3, %v1937_v9  ;;  %v1778_v15 = vmax.f32 %v1327_v10, %v1658_v6 }
  0xd9   :  { %2176 = vmatmul.msk.bf16.gmra.mxu0 %vm245_vm2, %v2597_v7  ;;  %2306 = vmatmul.msk.bf16.gmra.mxu1 %vm245_vm2, %v2623_v8 }
  0xda   :  { %v1834_v16 = vadd.f32 %v2893_v53, %v1778_v15  ;;  %2436 = vmatmul.msk.bf16.gmra.mxu2 %vm245_vm2, %v2649_v13  ;;  %2566 = vmatmul.msk.bf16.gmra.mxu3 %vm245_vm2, %v2675_v14 }
  0xdc   :  { %v1886_v18 = vmax.f32 %v1834_v16, 0.0  ;;  %v2600_v16 = vld [vmem:[%s3433_s0 + $0x78] sm:$0xff] }
  0xdd   :  { %v1210_v19 = vpop.f32.mrf.mxu2  ;;  %v1661_v20 = vpop.f32.mrf.mxu3 }
  0xde   :  { %v1938_v21 = vpack.c.bf16 %v1886_v18, %v1886_v18  ;;  %v1328_v22 = vmax.f32 %v877_v17, %v1210_v19  ;;  %v362_v23 = vpop.f32.mrf.mxu0  ;;  %v761_v24 = vpop.f32.mrf.mxu1  ;;  %v2626_v17 = vld [vmem:[%s3434_s1 + $0x78] sm:$0xff] }
  0xdf   :  { %v878_v28 = vmax.f32 %v362_v23, %v761_v24  ;;  %v2678_v23 = vld [vmem:[%s3436_s3 + $0x78] sm:$0xff] }
  0xe0   :  { %1991 = vst.msk [vmem:[%s3438_s6 + $0x1c] sm:$0xf] %vm1983_vm3, %v1938_v21  ;;  %v1779_v25 = vmax.f32 %v1328_v22, %v1661_v20  ;;  %v2652_v22 = vld [vmem:[%s3435_s2 + $0x78] sm:$0xff] }
  0xe2   :  { %v1835_v26 = vadd.f32 %v2893_v53, %v1779_v25 }
  0xe4   :  { %v1887_v27 = vmax.f32 %v1835_v26, 0.0 }
  0xe5   :  { %v1212_v29 = vpop.f32.mrf.mxu2  ;;  %v1663_v30 = vpop.f32.mrf.mxu3 }
  0xe6   :  { %v1939_v33 = vpack.c.bf16 %v1887_v27, %v1887_v27  ;;  %v1329_v34 = vmax.f32 %v878_v28, %v1212_v29  ;;  %v365_v35 = vpop.f32.mrf.mxu0  ;;  %v764_v36 = vpop.f32.mrf.mxu1 }
  0xe7   :  { %v879_v41 = vmax.f32 %v365_v35, %v764_v36 }
  0xe8   :  { %1992 = vst.msk [vmem:[%s3438_s6 + $0x20] sm:$0xf] %vm1983_vm3, %v1939_v33  ;;  %v1780_v39 = vmax.f32 %v1329_v34, %v1663_v30 }
  0xe9   :  { %2177 = vmatmul.msk.bf16.gmra.mxu0 %vm245_vm2, %v2598_v31  ;;  %2307 = vmatmul.msk.bf16.gmra.mxu1 %vm245_vm2, %v2624_v32 }
  0xea   :  { %v1836_v40 = vadd.f32 %v2893_v53, %v1780_v39  ;;  %2437 = vmatmul.msk.bf16.gmra.mxu2 %vm245_vm2, %v2650_v37  ;;  %2567 = vmatmul.msk.bf16.gmra.mxu3 %vm245_vm2, %v2676_v38 }
  0xec   :  { %v1888_v42 = vmax.f32 %v1836_v40, 0.0  ;;  %v2601_v40 = vld [vmem:[%s3433_s0 + $0x80] sm:$0xff] }
  0xed   :  { %v1215_v43 = vpop.f32.mrf.mxu2  ;;  %v1666_v44 = vpop.f32.mrf.mxu3 }
  0xee   :  { %v1940_v45 = vpack.c.bf16 %v1888_v42, %v1888_v42  ;;  %v1330_v46 = vmax.f32 %v879_v41, %v1215_v43  ;;  %v367_v47 = vpop.f32.mrf.mxu0  ;;  %v766_v48 = vpop.f32.mrf.mxu1  ;;  %v2627_v41 = vld [vmem:[%s3434_s1 + $0x80] sm:$0xff] }
  0xef   :  { %v880_v52 = vmax.f32 %v367_v47, %v766_v48  ;;  %v2679_v47 = vld [vmem:[%s3436_s3 + $0x80] sm:$0xff] }
  0xf0   :  { %1993 = vst.msk [vmem:[%s3438_s6 + $0x24] sm:$0xf] %vm1983_vm3, %v1940_v45  ;;  %v1781_v49 = vmax.f32 %v1330_v46, %v1666_v44  ;;  %v2653_v46 = vld [vmem:[%s3435_s2 + $0x80] sm:$0xff] }
  0xf2   :  { %v1837_v50 = vadd.f32 %v2893_v53, %v1781_v49 }
  0xf4   :  { %v1889_v51 = vmax.f32 %v1837_v50, 0.0 }
  0xf5   :  { %v1217_v54 = vpop.f32.mrf.mxu2  ;;  %v1668_v55 = vpop.f32.mrf.mxu3 }
  0xf6   :  { %v1941_v58 = vpack.c.bf16 %v1889_v51, %v1889_v51  ;;  %v1331_v59 = vmax.f32 %v880_v52, %v1217_v54  ;;  %v370_v60 = vpop.f32.mrf.mxu0  ;;  %v769_v61 = vpop.f32.mrf.mxu1 }
  0xf7   :  { %v881_v2 = vmax.f32 %v370_v60, %v769_v61 }
  0xf8   :  { %1994 = vst.msk [vmem:[%s3438_s6 + $0x28] sm:$0xf] %vm1983_vm3, %v1941_v58  ;;  %v1782_v0 = vmax.f32 %v1331_v59, %v1668_v55 }
  0xf9   :  { %2178 = vmatmul.msk.bf16.gmra.mxu0 %vm245_vm2, %v2599_v56  ;;  %2308 = vmatmul.msk.bf16.gmra.mxu1 %vm245_vm2, %v2625_v57 }
  0xfa   :  { %v1838_v1 = vadd.f32 %v2893_v53, %v1782_v0  ;;  %2438 = vmatmul.msk.bf16.gmra.mxu2 %vm245_vm2, %v2651_v62  ;;  %2568 = vmatmul.msk.bf16.gmra.mxu3 %vm245_vm2, %v2677_v63 }
  0xfc   :  { %v1890_v3 = vmax.f32 %v1838_v1, 0.0  ;;  %v2602_v1 = vld [vmem:[%s3433_s0 + $0x88] sm:$0xff] }
  0xfd   :  { %v1220_v4 = vpop.f32.mrf.mxu2  ;;  %v1671_v5 = vpop.f32.mrf.mxu3 }
  0xfe   :  { %v1942_v6 = vpack.c.bf16 %v1890_v3, %v1890_v3  ;;  %v1332_v7 = vmax.f32 %v881_v2, %v1220_v4  ;;  %v372_v8 = vpop.f32.mrf.mxu0  ;;  %v771_v9 = vpop.f32.mrf.mxu1  ;;  %v2628_v2 = vld [vmem:[%s3434_s1 + $0x88] sm:$0xff] }
  0xff   :  { %v882_v13 = vmax.f32 %v372_v8, %v771_v9  ;;  %v2680_v8 = vld [vmem:[%s3436_s3 + $0x88] sm:$0xff] }
 0x100   :  { %1995 = vst.msk [vmem:[%s3438_s6 + $0x2c] sm:$0xf] %vm1983_vm3, %v1942_v6  ;;  %v1783_v10 = vmax.f32 %v1332_v7, %v1671_v5  ;;  %v2654_v7 = vld [vmem:[%s3435_s2 + $0x88] sm:$0xff] }
 0x102   :  { %v1839_v11 = vadd.f32 %v2893_v53, %v1783_v10 }
 0x104   :  { %v1891_v12 = vmax.f32 %v1839_v11, 0.0 }
 0x105   :  { %v1222_v14 = vpop.f32.mrf.mxu2  ;;  %v1673_v15 = vpop.f32.mrf.mxu3 }
 0x106   :  { %v1943_v18 = vpack.c.bf16 %v1891_v12, %v1891_v12  ;;  %v1333_v19 = vmax.f32 %v882_v13, %v1222_v14  ;;  %v375_v20 = vpop.f32.mrf.mxu0  ;;  %v774_v21 = vpop.f32.mrf.mxu1 }
 0x107   :  { %v883_v26 = vmax.f32 %v375_v20, %v774_v21 }
 0x108   :  { %1996 = vst.msk [vmem:[%s3438_s6 + $0x30] sm:$0xf] %vm1983_vm3, %v1943_v18  ;;  %v1784_v24 = vmax.f32 %v1333_v19, %v1673_v15 }
 0x109   :  { %2179 = vmatmul.msk.bf16.gmra.mxu0 %vm245_vm2, %v2600_v16  ;;  %2309 = vmatmul.msk.bf16.gmra.mxu1 %vm245_vm2, %v2626_v17 }
 0x10a   :  { %v1840_v25 = vadd.f32 %v2893_v53, %v1784_v24  ;;  %2439 = vmatmul.msk.bf16.gmra.mxu2 %vm245_vm2, %v2652_v22  ;;  %2569 = vmatmul.msk.bf16.gmra.mxu3 %vm245_vm2, %v2678_v23 }
 0x10c   :  { %v1892_v27 = vmax.f32 %v1840_v25, 0.0  ;;  %v2603_v25 = vld [vmem:[%s3433_s0 + $0x90] sm:$0xff] }
 0x10d   :  { %v1225_v28 = vpop.f32.mrf.mxu2  ;;  %v1676_v29 = vpop.f32.mrf.mxu3 }
 0x10e   :  { %v1944_v30 = vpack.c.bf16 %v1892_v27, %v1892_v27  ;;  %v1334_v31 = vmax.f32 %v883_v26, %v1225_v28  ;;  %v377_v32 = vpop.f32.mrf.mxu0  ;;  %v776_v33 = vpop.f32.mrf.mxu1  ;;  %v2629_v26 = vld [vmem:[%s3434_s1 + $0x90] sm:$0xff] }
 0x10f   :  { %v884_v37 = vmax.f32 %v377_v32, %v776_v33  ;;  %v2681_v32 = vld [vmem:[%s3436_s3 + $0x90] sm:$0xff] }
 0x110   :  { %1997 = vst.msk [vmem:[%s3438_s6 + $0x34] sm:$0xf] %vm1983_vm3, %v1944_v30  ;;  %v1785_v34 = vmax.f32 %v1334_v31, %v1676_v29  ;;  %v2655_v31 = vld [vmem:[%s3435_s2 + $0x90] sm:$0xff] }
 0x112   :  { %v1841_v35 = vadd.f32 %v2893_v53, %v1785_v34 }
 0x114   :  { %v1893_v36 = vmax.f32 %v1841_v35, 0.0 }
 0x115   :  { %v1227_v38 = vpop.f32.mrf.mxu2  ;;  %v1678_v39 = vpop.f32.mrf.mxu3 }
 0x116   :  { %v1945_v42 = vpack.c.bf16 %v1893_v36, %v1893_v36  ;;  %v1335_v43 = vmax.f32 %v884_v37, %v1227_v38  ;;  %v380_v44 = vpop.f32.mrf.mxu0  ;;  %v779_v45 = vpop.f32.mrf.mxu1 }
 0x117   :  { %v885_v50 = vmax.f32 %v380_v44, %v779_v45 }
 0x118   :  { %1998 = vst.msk [vmem:[%s3438_s6 + $0x38] sm:$0xf] %vm1983_vm3, %v1945_v42  ;;  %v1786_v48 = vmax.f32 %v1335_v43, %v1678_v39 }
 0x119   :  { %2180 = vmatmul.msk.bf16.gmra.mxu0 %vm245_vm2, %v2601_v40  ;;  %2310 = vmatmul.msk.bf16.gmra.mxu1 %vm245_vm2, %v2627_v41 }
 0x11a   :  { %v1842_v49 = vadd.f32 %v2893_v53, %v1786_v48  ;;  %2440 = vmatmul.msk.bf16.gmra.mxu2 %vm245_vm2, %v2653_v46  ;;  %2570 = vmatmul.msk.bf16.gmra.mxu3 %vm245_vm2, %v2679_v47 }
 0x11c   :  { %v1894_v51 = vmax.f32 %v1842_v49, 0.0  ;;  %v2604_v49 = vld [vmem:[%s3433_s0 + $0x98] sm:$0xff] }
 0x11d   :  { %v1230_v52 = vpop.f32.mrf.mxu2  ;;  %v1681_v54 = vpop.f32.mrf.mxu3 }
 0x11e   :  { %v1946_v55 = vpack.c.bf16 %v1894_v51, %v1894_v51  ;;  %v1336_v56 = vmax.f32 %v885_v50, %v1230_v52  ;;  %v382_v57 = vpop.f32.mrf.mxu0  ;;  %v781_v58 = vpop.f32.mrf.mxu1  ;;  %v2630_v50 = vld [vmem:[%s3434_s1 + $0x98] sm:$0xff] }
 0x11f   :  { %v886_v62 = vmax.f32 %v382_v57, %v781_v58  ;;  %v2682_v57 = vld [vmem:[%s3436_s3 + $0x98] sm:$0xff] }
 0x120   :  { %1999 = vst.msk [vmem:[%s3438_s6 + $0x3c] sm:$0xf] %vm1983_vm3, %v1946_v55  ;;  %v1787_v59 = vmax.f32 %v1336_v56, %v1681_v54  ;;  %v2656_v56 = vld [vmem:[%s3435_s2 + $0x98] sm:$0xff] }
 0x122   :  { %v1843_v60 = vadd.f32 %v2893_v53, %v1787_v59 }
 0x124   :  { %v1895_v61 = vmax.f32 %v1843_v60, 0.0 }
 0x125   :  { %v1232_v63 = vpop.f32.mrf.mxu2  ;;  %v1683_v0 = vpop.f32.mrf.mxu3 }
 0x126   :  { %v1947_v3 = vpack.c.bf16 %v1895_v61, %v1895_v61  ;;  %v1337_v4 = vmax.f32 %v886_v62, %v1232_v63  ;;  %v385_v5 = vpop.f32.mrf.mxu0  ;;  %v784_v6 = vpop.f32.mrf.mxu1 }
 0x127   :  { %v887_v11 = vmax.f32 %v385_v5, %v784_v6 }
 0x128   :  { %2000 = vst.msk [vmem:[%s3438_s6 + $0x40] sm:$0xf] %vm1983_vm3, %v1947_v3  ;;  %v1788_v9 = vmax.f32 %v1337_v4, %v1683_v0 }
 0x129   :  { %2181 = vmatmul.msk.bf16.gmra.mxu0 %vm245_vm2, %v2602_v1  ;;  %2311 = vmatmul.msk.bf16.gmra.mxu1 %vm245_vm2, %v2628_v2 }
 0x12a   :  { %v1844_v10 = vadd.f32 %v2893_v53, %v1788_v9  ;;  %2441 = vmatmul.msk.bf16.gmra.mxu2 %vm245_vm2, %v2654_v7  ;;  %2571 = vmatmul.msk.bf16.gmra.mxu3 %vm245_vm2, %v2680_v8 }
 0x12c   :  { %v1896_v12 = vmax.f32 %v1844_v10, 0.0  ;;  %v2605_v10 = vld [vmem:[%s3433_s0 + $0xa0] sm:$0xff] }
 0x12d   :  { %v1235_v13 = vpop.f32.mrf.mxu2  ;;  %v1686_v14 = vpop.f32.mrf.mxu3 }
 0x12e   :  { %v1948_v15 = vpack.c.bf16 %v1896_v12, %v1896_v12  ;;  %v1338_v16 = vmax.f32 %v887_v11, %v1235_v13  ;;  %v387_v17 = vpop.f32.mrf.mxu0  ;;  %v786_v18 = vpop.f32.mrf.mxu1  ;;  %v2631_v11 = vld [vmem:[%s3434_s1 + $0xa0] sm:$0xff] }
 0x12f   :  { %v888_v22 = vmax.f32 %v387_v17, %v786_v18  ;;  %v2683_v17 = vld [vmem:[%s3436_s3 + $0xa0] sm:$0xff] }
 0x130   :  { %2001 = vst.msk [vmem:[%s3438_s6 + $0x44] sm:$0xf] %vm1983_vm3, %v1948_v15  ;;  %v1789_v19 = vmax.f32 %v1338_v16, %v1686_v14  ;;  %v2657_v16 = vld [vmem:[%s3435_s2 + $0xa0] sm:$0xff] }
 0x132   :  { %v1845_v20 = vadd.f32 %v2893_v53, %v1789_v19 }
 0x134   :  { %v1897_v21 = vmax.f32 %v1845_v20, 0.0 }
 0x135   :  { %v1237_v23 = vpop.f32.mrf.mxu2  ;;  %v1688_v24 = vpop.f32.mrf.mxu3 }
 0x136   :  { %v1949_v27 = vpack.c.bf16 %v1897_v21, %v1897_v21  ;;  %v1339_v28 = vmax.f32 %v888_v22, %v1237_v23  ;;  %v390_v29 = vpop.f32.mrf.mxu0  ;;  %v789_v30 = vpop.f32.mrf.mxu1 }
 0x137   :  { %v889_v35 = vmax.f32 %v390_v29, %v789_v30 }
 0x138   :  { %2002 = vst.msk [vmem:[%s3438_s6 + $0x48] sm:$0xf] %vm1983_vm3, %v1949_v27  ;;  %v1790_v33 = vmax.f32 %v1339_v28, %v1688_v24 }
 0x139   :  { %2182 = vmatmul.msk.bf16.gmra.mxu0 %vm245_vm2, %v2603_v25  ;;  %2312 = vmatmul.msk.bf16.gmra.mxu1 %vm245_vm2, %v2629_v26 }
 0x13a   :  { %v1846_v34 = vadd.f32 %v2893_v53, %v1790_v33  ;;  %2442 = vmatmul.msk.bf16.gmra.mxu2 %vm245_vm2, %v2655_v31  ;;  %2572 = vmatmul.msk.bf16.gmra.mxu3 %vm245_vm2, %v2681_v32 }
 0x13c   :  { %v1898_v36 = vmax.f32 %v1846_v34, 0.0  ;;  %v2606_v34 = vld [vmem:[%s3433_s0 + $0xa8] sm:$0xff] }
 0x13d   :  { %v1240_v37 = vpop.f32.mrf.mxu2  ;;  %v1691_v38 = vpop.f32.mrf.mxu3 }
 0x13e   :  { %v1950_v39 = vpack.c.bf16 %v1898_v36, %v1898_v36  ;;  %v1340_v40 = vmax.f32 %v889_v35, %v1240_v37  ;;  %v392_v41 = vpop.f32.mrf.mxu0  ;;  %v791_v42 = vpop.f32.mrf.mxu1  ;;  %v2632_v35 = vld [vmem:[%s3434_s1 + $0xa8] sm:$0xff] }
 0x13f   :  { %v890_v46 = vmax.f32 %v392_v41, %v791_v42  ;;  %v2684_v41 = vld [vmem:[%s3436_s3 + $0xa8] sm:$0xff] }
 0x140   :  { %2003 = vst.msk [vmem:[%s3438_s6 + $0x4c] sm:$0xf] %vm1983_vm3, %v1950_v39  ;;  %v1791_v43 = vmax.f32 %v1340_v40, %v1691_v38  ;;  %v2658_v40 = vld [vmem:[%s3435_s2 + $0xa8] sm:$0xff] }
 0x142   :  { %v1847_v44 = vadd.f32 %v2893_v53, %v1791_v43 }
 0x144   :  { %v1899_v45 = vmax.f32 %v1847_v44, 0.0 }
 0x145   :  { %v1242_v47 = vpop.f32.mrf.mxu2  ;;  %v1693_v48 = vpop.f32.mrf.mxu3 }
 0x146   :  { %v1951_v51 = vpack.c.bf16 %v1899_v45, %v1899_v45  ;;  %v1341_v52 = vmax.f32 %v890_v46, %v1242_v47  ;;  %v395_v54 = vpop.f32.mrf.mxu0  ;;  %v794_v55 = vpop.f32.mrf.mxu1 }
 0x147   :  { %v891_v60 = vmax.f32 %v395_v54, %v794_v55 }
 0x148   :  { %2004 = vst.msk [vmem:[%s3438_s6 + $0x50] sm:$0xf] %vm1983_vm3, %v1951_v51  ;;  %v1792_v58 = vmax.f32 %v1341_v52, %v1693_v48 }
 0x149   :  { %2183 = vmatmul.msk.bf16.gmra.mxu0 %vm245_vm2, %v2604_v49  ;;  %2313 = vmatmul.msk.bf16.gmra.mxu1 %vm245_vm2, %v2630_v50 }
 0x14a   :  { %v1848_v59 = vadd.f32 %v2893_v53, %v1792_v58  ;;  %2443 = vmatmul.msk.bf16.gmra.mxu2 %vm245_vm2, %v2656_v56  ;;  %2573 = vmatmul.msk.bf16.gmra.mxu3 %vm245_vm2, %v2682_v57 }
 0x14c   :  { %v1900_v61 = vmax.f32 %v1848_v59, 0.0  ;;  %v2607_v59 = vld [vmem:[%s3433_s0 + $0xb0] sm:$0xff] }
 0x14d   :  { %v1245_v62 = vpop.f32.mrf.mxu2  ;;  %v1696_v63 = vpop.f32.mrf.mxu3 }
 0x14e   :  { %v1952_v0 = vpack.c.bf16 %v1900_v61, %v1900_v61  ;;  %v1342_v1 = vmax.f32 %v891_v60, %v1245_v62  ;;  %v397_v2 = vpop.f32.mrf.mxu0  ;;  %v796_v3 = vpop.f32.mrf.mxu1  ;;  %v2633_v60 = vld [vmem:[%s3434_s1 + $0xb0] sm:$0xff] }
 0x14f   :  { %v892_v7 = vmax.f32 %v397_v2, %v796_v3  ;;  %v2685_v2 = vld [vmem:[%s3436_s3 + $0xb0] sm:$0xff] }
 0x150   :  { %2005 = vst.msk [vmem:[%s3438_s6 + $0x54] sm:$0xf] %vm1983_vm3, %v1952_v0  ;;  %v1793_v4 = vmax.f32 %v1342_v1, %v1696_v63  ;;  %v2659_v1 = vld [vmem:[%s3435_s2 + $0xb0] sm:$0xff] }
 0x152   :  { %v1849_v5 = vadd.f32 %v2893_v53, %v1793_v4 }
 0x154   :  { %v1901_v6 = vmax.f32 %v1849_v5, 0.0 }
 0x155   :  { %v1247_v8 = vpop.f32.mrf.mxu2  ;;  %v1698_v9 = vpop.f32.mrf.mxu3 }
 0x156   :  { %v1953_v12 = vpack.c.bf16 %v1901_v6, %v1901_v6  ;;  %v1343_v13 = vmax.f32 %v892_v7, %v1247_v8  ;;  %v400_v14 = vpop.f32.mrf.mxu0  ;;  %v799_v15 = vpop.f32.mrf.mxu1 }
 0x157   :  { %v893_v20 = vmax.f32 %v400_v14, %v799_v15 }
 0x158   :  { %2006 = vst.msk [vmem:[%s3438_s6 + $0x58] sm:$0xf] %vm1983_vm3, %v1953_v12  ;;  %v1794_v18 = vmax.f32 %v1343_v13, %v1698_v9 }
 0x159   :  { %2184 = vmatmul.msk.bf16.gmra.mxu0 %vm245_vm2, %v2605_v10  ;;  %2314 = vmatmul.msk.bf16.gmra.mxu1 %vm245_vm2, %v2631_v11 }
 0x15a   :  { %v1850_v19 = vadd.f32 %v2893_v53, %v1794_v18  ;;  %2444 = vmatmul.msk.bf16.gmra.mxu2 %vm245_vm2, %v2657_v16  ;;  %2574 = vmatmul.msk.bf16.gmra.mxu3 %vm245_vm2, %v2683_v17 }
 0x15c   :  { %v1902_v21 = vmax.f32 %v1850_v19, 0.0  ;;  %v2608_v19 = vld [vmem:[%s3433_s0 + $0xb8] sm:$0xff] }
 0x15d   :  { %v1250_v22 = vpop.f32.mrf.mxu2  ;;  %v1701_v23 = vpop.f32.mrf.mxu3 }
 0x15e   :  { %v1954_v24 = vpack.c.bf16 %v1902_v21, %v1902_v21  ;;  %v1344_v25 = vmax.f32 %v893_v20, %v1250_v22  ;;  %v402_v26 = vpop.f32.mrf.mxu0  ;;  %v801_v27 = vpop.f32.mrf.mxu1  ;;  %v2634_v20 = vld [vmem:[%s3434_s1 + $0xb8] sm:$0xff] }
 0x15f   :  { %v894_v31 = vmax.f32 %v402_v26, %v801_v27  ;;  %v2686_v26 = vld [vmem:[%s3436_s3 + $0xb8] sm:$0xff] }
 0x160   :  { %2007 = vst.msk [vmem:[%s3438_s6 + $0x5c] sm:$0xf] %vm1983_vm3, %v1954_v24  ;;  %v1795_v28 = vmax.f32 %v1344_v25, %v1701_v23  ;;  %v2660_v25 = vld [vmem:[%s3435_s2 + $0xb8] sm:$0xff] }
 0x162   :  { %v1851_v29 = vadd.f32 %v2893_v53, %v1795_v28 }
 0x164   :  { %v1903_v30 = vmax.f32 %v1851_v29, 0.0 }
 0x165   :  { %v1252_v32 = vpop.f32.mrf.mxu2  ;;  %v1703_v33 = vpop.f32.mrf.mxu3 }
 0x166   :  { %v1955_v36 = vpack.c.bf16 %v1903_v30, %v1903_v30  ;;  %v1345_v37 = vmax.f32 %v894_v31, %v1252_v32  ;;  %v405_v38 = vpop.f32.mrf.mxu0  ;;  %v804_v39 = vpop.f32.mrf.mxu1 }
 0x167   :  { %v895_v44 = vmax.f32 %v405_v38, %v804_v39 }
 0x168   :  { %2008 = vst.msk [vmem:[%s3438_s6 + $0x60] sm:$0xf] %vm1983_vm3, %v1955_v36  ;;  %v1796_v42 = vmax.f32 %v1345_v37, %v1703_v33 }
 0x169   :  { %2185 = vmatmul.msk.bf16.gmra.mxu0 %vm245_vm2, %v2606_v34  ;;  %2315 = vmatmul.msk.bf16.gmra.mxu1 %vm245_vm2, %v2632_v35 }
 0x16a   :  { %v1852_v43 = vadd.f32 %v2893_v53, %v1796_v42  ;;  %2445 = vmatmul.msk.bf16.gmra.mxu2 %vm245_vm2, %v2658_v40  ;;  %2575 = vmatmul.msk.bf16.gmra.mxu3 %vm245_vm2, %v2684_v41 }
 0x16c   :  { %v1904_v45 = vmax.f32 %v1852_v43, 0.0  ;;  %v2609_v43 = vld [vmem:[%s3433_s0 + $0xc0] sm:$0xff] }
 0x16d   :  { %v1255_v46 = vpop.f32.mrf.mxu2  ;;  %v1706_v47 = vpop.f32.mrf.mxu3 }
 0x16e   :  { %v1956_v48 = vpack.c.bf16 %v1904_v45, %v1904_v45  ;;  %v1346_v49 = vmax.f32 %v895_v44, %v1255_v46  ;;  %v407_v50 = vpop.f32.mrf.mxu0  ;;  %v806_v51 = vpop.f32.mrf.mxu1  ;;  %v2635_v44 = vld [vmem:[%s3434_s1 + $0xc0] sm:$0xff] }
 0x16f   :  { %v896_v56 = vmax.f32 %v407_v50, %v806_v51  ;;  %v2687_v50 = vld [vmem:[%s3436_s3 + $0xc0] sm:$0xff] }
 0x170   :  { %2009 = vst.msk [vmem:[%s3438_s6 + $0x64] sm:$0xf] %vm1983_vm3, %v1956_v48  ;;  %v1797_v52 = vmax.f32 %v1346_v49, %v1706_v47  ;;  %v2661_v49 = vld [vmem:[%s3435_s2 + $0xc0] sm:$0xff] }
 0x172   :  { %v1853_v54 = vadd.f32 %v2893_v53, %v1797_v52 }
 0x174   :  { %v1905_v55 = vmax.f32 %v1853_v54, 0.0 }
 0x175   :  { %v1257_v57 = vpop.f32.mrf.mxu2  ;;  %v1708_v58 = vpop.f32.mrf.mxu3 }
 0x176   :  { %v1957_v61 = vpack.c.bf16 %v1905_v55, %v1905_v55  ;;  %v1347_v62 = vmax.f32 %v896_v56, %v1257_v57  ;;  %v410_v63 = vpop.f32.mrf.mxu0  ;;  %v809_v0 = vpop.f32.mrf.mxu1 }
 0x177   :  { %v897_v5 = vmax.f32 %v410_v63, %v809_v0 }
 0x178   :  { %2010 = vst.msk [vmem:[%s3438_s6 + $0x68] sm:$0xf] %vm1983_vm3, %v1957_v61  ;;  %v1798_v3 = vmax.f32 %v1347_v62, %v1708_v58 }
 0x179   :  { %2186 = vmatmul.msk.bf16.gmra.mxu0 %vm245_vm2, %v2607_v59  ;;  %2316 = vmatmul.msk.bf16.gmra.mxu1 %vm245_vm2, %v2633_v60 }
 0x17a   :  { %v1854_v4 = vadd.f32 %v2893_v53, %v1798_v3  ;;  %2446 = vmatmul.msk.bf16.gmra.mxu2 %vm245_vm2, %v2659_v1  ;;  %2576 = vmatmul.msk.bf16.gmra.mxu3 %vm245_vm2, %v2685_v2 }
 0x17c   :  { %v1906_v6 = vmax.f32 %v1854_v4, 0.0  ;;  %v2610_v4 = vld [vmem:[%s3433_s0 + $0xc8] sm:$0xff] }
 0x17d   :  { %v1260_v7 = vpop.f32.mrf.mxu2  ;;  %v1711_v8 = vpop.f32.mrf.mxu3 }
 0x17e   :  { %v1958_v9 = vpack.c.bf16 %v1906_v6, %v1906_v6  ;;  %v1348_v10 = vmax.f32 %v897_v5, %v1260_v7  ;;  %v412_v11 = vpop.f32.mrf.mxu0  ;;  %v811_v12 = vpop.f32.mrf.mxu1  ;;  %v2636_v5 = vld [vmem:[%s3434_s1 + $0xc8] sm:$0xff] }
 0x17f   :  { %v898_v16 = vmax.f32 %v412_v11, %v811_v12  ;;  %v2688_v11 = vld [vmem:[%s3436_s3 + $0xc8] sm:$0xff] }
 0x180   :  { %2011 = vst.msk [vmem:[%s3438_s6 + $0x6c] sm:$0xf] %vm1983_vm3, %v1958_v9  ;;  %v1799_v13 = vmax.f32 %v1348_v10, %v1711_v8  ;;  %v2662_v10 = vld [vmem:[%s3435_s2 + $0xc8] sm:$0xff] }
 0x182   :  { %v1855_v14 = vadd.f32 %v2893_v53, %v1799_v13 }
 0x184   :  { %v1907_v15 = vmax.f32 %v1855_v14, 0.0 }
 0x185   :  { %v1262_v17 = vpop.f32.mrf.mxu2  ;;  %v1713_v18 = vpop.f32.mrf.mxu3 }
 0x186   :  { %v1959_v21 = vpack.c.bf16 %v1907_v15, %v1907_v15  ;;  %v1349_v22 = vmax.f32 %v898_v16, %v1262_v17  ;;  %v415_v23 = vpop.f32.mrf.mxu0  ;;  %v814_v24 = vpop.f32.mrf.mxu1 }
 0x187   :  { %v899_v29 = vmax.f32 %v415_v23, %v814_v24 }
 0x188   :  { %2012 = vst.msk [vmem:[%s3438_s6 + $0x70] sm:$0xf] %vm1983_vm3, %v1959_v21  ;;  %v1800_v27 = vmax.f32 %v1349_v22, %v1713_v18 }
 0x189   :  { %2187 = vmatmul.msk.bf16.gmra.mxu0 %vm245_vm2, %v2608_v19  ;;  %2317 = vmatmul.msk.bf16.gmra.mxu1 %vm245_vm2, %v2634_v20 }
 0x18a   :  { %v1856_v28 = vadd.f32 %v2893_v53, %v1800_v27  ;;  %2447 = vmatmul.msk.bf16.gmra.mxu2 %vm245_vm2, %v2660_v25  ;;  %2577 = vmatmul.msk.bf16.gmra.mxu3 %vm245_vm2, %v2686_v26 }
 0x18c   :  { %v1908_v30 = vmax.f32 %v1856_v28, 0.0 }
 0x18d   :  { %v1265_v31 = vpop.f32.mrf.mxu2  ;;  %v1716_v32 = vpop.f32.mrf.mxu3 }
 0x18e   :  { %v1960_v33 = vpack.c.bf16 %v1908_v30, %v1908_v30  ;;  %v1350_v34 = vmax.f32 %v899_v29, %v1265_v31  ;;  %v417_v35 = vpop.f32.mrf.mxu0  ;;  %v816_v36 = vpop.f32.mrf.mxu1 }
 0x18f   :  { %v900_v40 = vmax.f32 %v417_v35, %v816_v36 }
 0x190   :  { %2013 = vst.msk [vmem:[%s3438_s6 + $0x74] sm:$0xf] %vm1983_vm3, %v1960_v33  ;;  %v1801_v37 = vmax.f32 %v1350_v34, %v1716_v32 }
 0x192   :  { %v1857_v38 = vadd.f32 %v2893_v53, %v1801_v37 }
 0x194   :  { %v1909_v39 = vmax.f32 %v1857_v38, 0.0 }
 0x195   :  { %v1267_v41 = vpop.f32.mrf.mxu2  ;;  %v1718_v42 = vpop.f32.mrf.mxu3 }
 0x196   :  { %v1961_v45 = vpack.c.bf16 %v1909_v39, %v1909_v39  ;;  %v1351_v46 = vmax.f32 %v900_v40, %v1267_v41  ;;  %v420_v47 = vpop.f32.mrf.mxu0  ;;  %v819_v48 = vpop.f32.mrf.mxu1 }
 0x197   :  { %v901_v54 = vmax.f32 %v420_v47, %v819_v48 }
 0x198   :  { %2014 = vst.msk [vmem:[%s3438_s6 + $0x78] sm:$0xf] %vm1983_vm3, %v1961_v45  ;;  %v1802_v51 = vmax.f32 %v1351_v46, %v1718_v42 }
 0x199   :  { %2188 = vmatmul.msk.bf16.gmra.mxu0 %vm245_vm2, %v2609_v43  ;;  %2318 = vmatmul.msk.bf16.gmra.mxu1 %vm245_vm2, %v2635_v44 }
 0x19a   :  { %v1858_v52 = vadd.f32 %v2893_v53, %v1802_v51  ;;  %2448 = vmatmul.msk.bf16.gmra.mxu2 %vm245_vm2, %v2661_v49  ;;  %2578 = vmatmul.msk.bf16.gmra.mxu3 %vm245_vm2, %v2687_v50 }
 0x19c   :  { %v1910_v55 = vmax.f32 %v1858_v52, 0.0 }
 0x19d   :  { %v1270_v56 = vpop.f32.mrf.mxu2  ;;  %v1721_v57 = vpop.f32.mrf.mxu3 }
 0x19e   :  { %v1962_v58 = vpack.c.bf16 %v1910_v55, %v1910_v55  ;;  %v1352_v59 = vmax.f32 %v901_v54, %v1270_v56  ;;  %v422_v60 = vpop.f32.mrf.mxu0  ;;  %v821_v61 = vpop.f32.mrf.mxu1 }
 0x19f   :  { %v902_v1 = vmax.f32 %v422_v60, %v821_v61 }
 0x1a0   :  { %2015 = vst.msk [vmem:[%s3438_s6 + $0x7c] sm:$0xf] %vm1983_vm3, %v1962_v58  ;;  %v1803_v62 = vmax.f32 %v1352_v59, %v1721_v57 }
 0x1a2   :  { %v1859_v63 = vadd.f32 %v2893_v53, %v1803_v62 }
 0x1a4   :  { %v1911_v0 = vmax.f32 %v1859_v63, 0.0 }
 0x1a5   :  { %v1272_v2 = vpop.f32.mrf.mxu2  ;;  %v1723_v3 = vpop.f32.mrf.mxu3 }
 0x1a6   :  { %v1963_v6 = vpack.c.bf16 %v1911_v0, %v1911_v0  ;;  %v1353_v7 = vmax.f32 %v902_v1, %v1272_v2  ;;  %v425_v8 = vpop.f32.mrf.mxu0  ;;  %v824_v9 = vpop.f32.mrf.mxu1 }
 0x1a7   :  { %v903_v14 = vmax.f32 %v425_v8, %v824_v9 }
 0x1a8   :  { %2016 = vst.msk [vmem:[%s3438_s6 + $0x80] sm:$0xf] %vm1983_vm3, %v1963_v6  ;;  %v1804_v12 = vmax.f32 %v1353_v7, %v1723_v3 }
 0x1a9   :  { %2189 = vmatmul.msk.bf16.gmra.mxu0 %vm245_vm2, %v2610_v4  ;;  %2319 = vmatmul.msk.bf16.gmra.mxu1 %vm245_vm2, %v2636_v5 }
 0x1aa   :  { %v1860_v13 = vadd.f32 %v2893_v53, %v1804_v12  ;;  %2449 = vmatmul.msk.bf16.gmra.mxu2 %vm245_vm2, %v2662_v10  ;;  %2579 = vmatmul.msk.bf16.gmra.mxu3 %vm245_vm2, %v2688_v11  ;;  %v3340_v53 = vld [vmem:[%s3437_s5] ss:$0 sm:$0xff] }
 0x1ac   :  { %v1912_v15 = vmax.f32 %v1860_v13, 0.0 }
 0x1ad   :  { %v1275_v16 = vpop.f32.mrf.mxu2  ;;  %v1726_v17 = vpop.f32.mrf.mxu3 }
 0x1ae   :  { %v1964_v18 = vpack.c.bf16 %v1912_v15, %v1912_v15  ;;  %v1354_v19 = vmax.f32 %v903_v14, %v1275_v16  ;;  %v427_v20 = vpop.f32.mrf.mxu0  ;;  %v826_v21 = vpop.f32.mrf.mxu1 }
 0x1af   :  { %v904_v25 = vmax.f32 %v427_v20, %v826_v21 }
 0x1b0   :  { %2017 = vst.msk [vmem:[%s3438_s6 + $0x84] sm:$0xf] %vm1983_vm3, %v1964_v18  ;;  %v1805_v22 = vmax.f32 %v1354_v19, %v1726_v17 }
 0x1b2   :  { %v1861_v23 = vadd.f32 %v3340_v53, %v1805_v22 }
 0x1b4   :  { %v1913_v24 = vmax.f32 %v1861_v23, 0.0 }
 0x1b5   :  { %v1277_v26 = vpop.f32.mrf.mxu2  ;;  %v1728_v27 = vpop.f32.mrf.mxu3 }
 0x1b6   :  { %v1965_v28 = vpack.c.bf16 %v1913_v24, %v1913_v24  ;;  %v1355_v29 = vmax.f32 %v904_v25, %v1277_v26  ;;  %v430_v30 = vpop.f32.mrf.mxu0  ;;  %v829_v31 = vpop.f32.mrf.mxu1 }
 0x1b7   :  { %v905_v34 = vmax.f32 %v430_v30, %v829_v31 }
 0x1b8   :  { %2018 = vst.msk [vmem:[%s3438_s6 + $0x88] sm:$0xf] %vm1983_vm3, %v1965_v28  ;;  %v1806_v32 = vmax.f32 %v1355_v29, %v1728_v27 }
 0x1ba   :  { %v1862_v33 = vadd.f32 %v3340_v53, %v1806_v32 }
 0x1bc   :  { %v1914_v35 = vmax.f32 %v1862_v33, 0.0 }
 0x1bd   :  { %v1280_v36 = vpop.f32.mrf.mxu2  ;;  %v1731_v37 = vpop.f32.mrf.mxu3 }
 0x1be   :  { %v1966_v38 = vpack.c.bf16 %v1914_v35, %v1914_v35  ;;  %v1356_v39 = vmax.f32 %v905_v34, %v1280_v36  ;;  %v432_v40 = vpop.f32.mrf.mxu0  ;;  %v831_v41 = vpop.f32.mrf.mxu1 }
 0x1bf   :  { %v906_v45 = vmax.f32 %v432_v40, %v831_v41 }
 0x1c0   :  { %2019 = vst.msk [vmem:[%s3438_s6 + $0x8c] sm:$0xf] %vm1983_vm3, %v1966_v38  ;;  %v1807_v42 = vmax.f32 %v1356_v39, %v1731_v37 }
 0x1c2   :  { %v1863_v43 = vadd.f32 %v3340_v53, %v1807_v42 }
 0x1c4   :  { %v1915_v44 = vmax.f32 %v1863_v43, 0.0 }
 0x1c5   :  { %v1282_v46 = vpop.f32.mrf.mxu2  ;;  %v1733_v47 = vpop.f32.mrf.mxu3 }
 0x1c6   :  { %v1967_v48 = vpack.c.bf16 %v1915_v44, %v1915_v44  ;;  %v1357_v49 = vmax.f32 %v906_v45, %v1282_v46  ;;  %v435_v50 = vpop.f32.mrf.mxu0  ;;  %v834_v51 = vpop.f32.mrf.mxu1 }
 0x1c7   :  { %v907_v55 = vmax.f32 %v435_v50, %v834_v51 }
 0x1c8   :  { %2020 = vst.msk [vmem:[%s3438_s6 + $0x90] sm:$0xf] %vm1983_vm3, %v1967_v48  ;;  %v1808_v52 = vmax.f32 %v1357_v49, %v1733_v47 }
 0x1ca   :  { %v1864_v54 = vadd.f32 %v3340_v53, %v1808_v52 }
 0x1cc   :  { %v1916_v56 = vmax.f32 %v1864_v54, 0.0 }
 0x1cd   :  { %v1285_v57 = vpop.f32.mrf.mxu2  ;;  %v1736_v58 = vpop.f32.mrf.mxu3 }
 0x1ce   :  { %v1968_v59 = vpack.c.bf16 %v1916_v56, %v1916_v56  ;;  %v1358_v60 = vmax.f32 %v907_v55, %v1285_v57  ;;  %v437_v61 = vpop.f32.mrf.mxu0  ;;  %v836_v62 = vpop.f32.mrf.mxu1 }
 0x1cf   :  { %v908_v2 = vmax.f32 %v437_v61, %v836_v62 }
 0x1d0   :  { %2021 = vst.msk [vmem:[%s3438_s6 + $0x94] sm:$0xf] %vm1983_vm3, %v1968_v59  ;;  %v1809_v63 = vmax.f32 %v1358_v60, %v1736_v58 }
 0x1d2   :  { %v1865_v0 = vadd.f32 %v3340_v53, %v1809_v63 }
 0x1d4   :  { %v1917_v1 = vmax.f32 %v1865_v0, 0.0 }
 0x1d5   :  { %v1287_v3 = vpop.f32.mrf.mxu2  ;;  %v1738_v4 = vpop.f32.mrf.mxu3 }
 0x1d6   :  { %v1969_v5 = vpack.c.bf16 %v1917_v1, %v1917_v1  ;;  %v1359_v6 = vmax.f32 %v908_v2, %v1287_v3  ;;  %v440_v7 = vpop.f32.mrf.mxu0  ;;  %v839_v8 = vpop.f32.mrf.mxu1 }
 0x1d7   :  { %v909_v11 = vmax.f32 %v440_v7, %v839_v8 }
 0x1d8   :  { %2022 = vst.msk [vmem:[%s3438_s6 + $0x98] sm:$0xf] %vm1983_vm3, %v1969_v5  ;;  %v1810_v9 = vmax.f32 %v1359_v6, %v1738_v4 }
 0x1da   :  { %v1866_v10 = vadd.f32 %v3340_v53, %v1810_v9 }
 0x1dc   :  { %v1918_v12 = vmax.f32 %v1866_v10, 0.0 }
 0x1dd   :  { %v1290_v13 = vpop.f32.mrf.mxu2  ;;  %v1741_v14 = vpop.f32.mrf.mxu3 }
 0x1de   :  { %v1970_v15 = vpack.c.bf16 %v1918_v12, %v1918_v12  ;;  %v1360_v16 = vmax.f32 %v909_v11, %v1290_v13  ;;  %v442_v17 = vpop.f32.mrf.mxu0  ;;  %v841_v18 = vpop.f32.mrf.mxu1 }
 0x1df   :  { %v910_v22 = vmax.f32 %v442_v17, %v841_v18 }
 0x1e0   :  { %2023 = vst.msk [vmem:[%s3438_s6 + $0x9c] sm:$0xf] %vm1983_vm3, %v1970_v15  ;;  %v1811_v19 = vmax.f32 %v1360_v16, %v1741_v14 }
 0x1e2   :  { %v1867_v20 = vadd.f32 %v3340_v53, %v1811_v19 }
 0x1e4   :  { %v1919_v21 = vmax.f32 %v1867_v20, 0.0 }
 0x1e5   :  { %v1292_v23 = vpop.f32.mrf.mxu2  ;;  %v1743_v24 = vpop.f32.mrf.mxu3 }
 0x1e6   :  { %v1971_v25 = vpack.c.bf16 %v1919_v21, %v1919_v21  ;;  %v1361_v26 = vmax.f32 %v910_v22, %v1292_v23  ;;  %v445_v27 = vpop.f32.mrf.mxu0  ;;  %v844_v28 = vpop.f32.mrf.mxu1 }
 0x1e7   :  { %v911_v31 = vmax.f32 %v445_v27, %v844_v28 }
 0x1e8   :  { %2024 = vst.msk [vmem:[%s3438_s6 + $0xa0] sm:$0xf] %vm1983_vm3, %v1971_v25  ;;  %v1812_v29 = vmax.f32 %v1361_v26, %v1743_v24 }
 0x1ea   :  { %v1868_v30 = vadd.f32 %v3340_v53, %v1812_v29 }
 0x1ec   :  { %v1920_v32 = vmax.f32 %v1868_v30, 0.0 }
 0x1ed   :  { %v1295_v33 = vpop.f32.mrf.mxu2  ;;  %v1746_v34 = vpop.f32.mrf.mxu3 }
 0x1ee   :  { %v1972_v35 = vpack.c.bf16 %v1920_v32, %v1920_v32  ;;  %v1362_v36 = vmax.f32 %v911_v31, %v1295_v33  ;;  %v447_v37 = vpop.f32.mrf.mxu0  ;;  %v846_v38 = vpop.f32.mrf.mxu1 }
 0x1ef   :  { %v912_v42 = vmax.f32 %v447_v37, %v846_v38 }
 0x1f0   :  { %2025 = vst.msk [vmem:[%s3438_s6 + $0xa4] sm:$0xf] %vm1983_vm3, %v1972_v35  ;;  %v1813_v39 = vmax.f32 %v1362_v36, %v1746_v34 }
 0x1f2   :  { %v1869_v40 = vadd.f32 %v3340_v53, %v1813_v39 }
 0x1f4   :  { %v1921_v41 = vmax.f32 %v1869_v40, 0.0 }
 0x1f5   :  { %v1297_v43 = vpop.f32.mrf.mxu2  ;;  %v1748_v44 = vpop.f32.mrf.mxu3 }
 0x1f6   :  { %v1973_v45 = vpack.c.bf16 %v1921_v41, %v1921_v41  ;;  %v1363_v46 = vmax.f32 %v912_v42, %v1297_v43  ;;  %v450_v47 = vpop.f32.mrf.mxu0  ;;  %v849_v48 = vpop.f32.mrf.mxu1 }
 0x1f7   :  { %v913_v51 = vmax.f32 %v450_v47, %v849_v48 }
 0x1f8   :  { %2026 = vst.msk [vmem:[%s3438_s6 + $0xa8] sm:$0xf] %vm1983_vm3, %v1973_v45  ;;  %v1814_v49 = vmax.f32 %v1363_v46, %v1748_v44 }
 0x1fa   :  { %v1870_v50 = vadd.f32 %v3340_v53, %v1814_v49 }
 0x1fc   :  { %v1922_v52 = vmax.f32 %v1870_v50, 0.0 }
 0x1fd   :  { %v1300_v54 = vpop.f32.mrf.mxu2  ;;  %v1751_v55 = vpop.f32.mrf.mxu3 }
 0x1fe   :  { %v1974_v56 = vpack.c.bf16 %v1922_v52, %v1922_v52  ;;  %v1364_v57 = vmax.f32 %v913_v51, %v1300_v54  ;;  %v452_v58 = vpop.f32.mrf.mxu0  ;;  %v851_v59 = vpop.f32.mrf.mxu1 }
 0x1ff   :  { %v914_v63 = vmax.f32 %v452_v58, %v851_v59 }
 0x200   :  { %2027 = vst.msk [vmem:[%s3438_s6 + $0xac] sm:$0xf] %vm1983_vm3, %v1974_v56  ;;  %v1815_v60 = vmax.f32 %v1364_v57, %v1751_v55 }
 0x202   :  { %v1871_v61 = vadd.f32 %v3340_v53, %v1815_v60 }
 0x204   :  { %v1923_v62 = vmax.f32 %v1871_v61, 0.0 }
 0x205   :  { %v1302_v0 = vpop.f32.mrf.mxu2  ;;  %v1753_v1 = vpop.f32.mrf.mxu3 }
 0x206   :  { %v1975_v2 = vpack.c.bf16 %v1923_v62, %v1923_v62  ;;  %v1365_v3 = vmax.f32 %v914_v63, %v1302_v0  ;;  %v455_v4 = vpop.f32.mrf.mxu0  ;;  %v854_v5 = vpop.f32.mrf.mxu1 }
 0x207   :  { %v915_v8 = vmax.f32 %v455_v4, %v854_v5 }
 0x208   :  { %2028 = vst.msk [vmem:[%s3438_s6 + $0xb0] sm:$0xf] %vm1983_vm3, %v1975_v2  ;;  %v1816_v6 = vmax.f32 %v1365_v3, %v1753_v1 }
 0x20a   :  { %v1872_v7 = vadd.f32 %v3340_v53, %v1816_v6 }
 0x20c   :  { %v1924_v9 = vmax.f32 %v1872_v7, 0.0 }
 0x20d   :  { %v1305_v10 = vpop.f32.mrf.mxu2  ;;  %v1756_v11 = vpop.f32.mrf.mxu3 }
 0x20e   :  { %v1976_v12 = vpack.c.bf16 %v1924_v9, %v1924_v9  ;;  %v1366_v13 = vmax.f32 %v915_v8, %v1305_v10  ;;  %v457_v14 = vpop.f32.mrf.mxu0  ;;  %v856_v15 = vpop.f32.mrf.mxu1 }
 0x20f   :  { %v916_v19 = vmax.f32 %v457_v14, %v856_v15 }
 0x210   :  { %2029 = vst.msk [vmem:[%s3438_s6 + $0xb4] sm:$0xf] %vm1983_vm3, %v1976_v12  ;;  %v1817_v16 = vmax.f32 %v1366_v13, %v1756_v11 }
 0x212   :  { %v1873_v17 = vadd.f32 %v3340_v53, %v1817_v16 }
 0x214   :  { %v1925_v18 = vmax.f32 %v1873_v17, 0.0 }
 0x215   :  { %v1307_v20 = vpop.f32.mrf.mxu2  ;;  %v1758_v21 = vpop.f32.mrf.mxu3 }
 0x216   :  { %v1977_v22 = vpack.c.bf16 %v1925_v18, %v1925_v18  ;;  %v1367_v23 = vmax.f32 %v916_v19, %v1307_v20  ;;  %v460_v24 = vpop.f32.mrf.mxu0  ;;  %v859_v25 = vpop.f32.mrf.mxu1 }
 0x217   :  { %v917_v28 = vmax.f32 %v460_v24, %v859_v25 }
 0x218   :  { %2030 = vst.msk [vmem:[%s3438_s6 + $0xb8] sm:$0xf] %vm1983_vm3, %v1977_v22  ;;  %v1818_v26 = vmax.f32 %v1367_v23, %v1758_v21 }
 0x21a   :  { %v1874_v27 = vadd.f32 %v3340_v53, %v1818_v26 }
 0x21c   :  { %v1926_v29 = vmax.f32 %v1874_v27, 0.0 }
 0x21d   :  { %v1310_v30 = vpop.f32.mrf.mxu2  ;;  %v1761_v31 = vpop.f32.mrf.mxu3 }
 0x21e   :  { %v1978_v32 = vpack.c.bf16 %v1926_v29, %v1926_v29  ;;  %v1368_v33 = vmax.f32 %v917_v28, %v1310_v30  ;;  %v462_v34 = vpop.f32.mrf.mxu0  ;;  %v861_v35 = vpop.f32.mrf.mxu1 }
 0x21f   :  { %v918_v39 = vmax.f32 %v462_v34, %v861_v35 }
 0x220   :  { %2031 = vst.msk [vmem:[%s3438_s6 + $0xbc] sm:$0xf] %vm1983_vm3, %v1978_v32  ;;  %v1819_v36 = vmax.f32 %v1368_v33, %v1761_v31 }
 0x222   :  { %v1875_v37 = vadd.f32 %v3340_v53, %v1819_v36 }
 0x224   :  { %v1927_v38 = vmax.f32 %v1875_v37, 0.0 }
 0x225   :  { %v1312_v40 = vpop.f32.mrf.mxu2  ;;  %v1763_v41 = vpop.f32.mrf.mxu3 }
 0x226   :  { %v1979_v42 = vpack.c.bf16 %v1927_v38, %v1927_v38  ;;  %v1369_v43 = vmax.f32 %v918_v39, %v1312_v40  ;;  %v465_v44 = vpop.f32.mrf.mxu0  ;;  %v864_v45 = vpop.f32.mrf.mxu1 }
 0x227   :  { %v919_v48 = vmax.f32 %v465_v44, %v864_v45 }
 0x228   :  { %2032 = vst.msk [vmem:[%s3438_s6 + $0xc0] sm:$0xf] %vm1983_vm3, %v1979_v42  ;;  %v1820_v46 = vmax.f32 %v1369_v43, %v1763_v41 }
 0x22a   :  { %v1876_v47 = vadd.f32 %v3340_v53, %v1820_v46 }
 0x22c   :  { %v1928_v49 = vmax.f32 %v1876_v47, 0.0 }
 0x22d   :  { %v1315_v50 = vpop.f32.mrf.mxu2  ;;  %v1766_v51 = vpop.f32.mrf.mxu3 }
 0x22e   :  { %v1980_v52 = vpack.c.bf16 %v1928_v49, %v1928_v49  ;;  %v1370_v54 = vmax.f32 %v919_v48, %v1315_v50  ;;  %v467_v56 = vpop.f32.mrf.mxu0  ;;  %v866_v57 = vpop.f32.mrf.mxu1 }
 0x22f   :  { %v920_v60 = vmax.f32 %v467_v56, %v866_v57 }
 0x230   :  { %2033 = vst.msk [vmem:[%s3438_s6 + $0xc4] sm:$0xf] %vm1983_vm3, %v1980_v52  ;;  %v1821_v55 = vmax.f32 %v1370_v54, %v1766_v51 }
 0x232   :  { %v1877_v58 = vadd.f32 %v3340_v53, %v1821_v55 }
 0x234   :  { %v1929_v59 = vmax.f32 %v1877_v58, 0.0 }
 0x235   :  { %v1317_v61 = vpop.f32.mrf.mxu2  ;;  %v1768_v0 = vpop.f32.mrf.mxu3 }
 0x236   :  { %v1981_v62 = vpack.c.bf16 %v1929_v59, %v1929_v59  ;;  %v1371_v63 = vmax.f32 %v920_v60, %v1317_v61 }
 0x238   :  { %2034 = vst.msk [vmem:[%s3438_s6 + $0xc8] sm:$0xf] %vm1983_vm3, %v1981_v62  ;;  %v1822_v1 = vmax.f32 %v1371_v63, %v1768_v0 }
 0x23a   :  { %v1878_v2 = vadd.f32 %v3340_v53, %v1822_v1 }
 0x23c   :  { %v1930_v3 = vmax.f32 %v1878_v2, 0.0 }
 0x23e   :  { %v1982_v4 = vpack.c.bf16 %v1930_v3, %v1930_v3 }
 0x240   :  { %2035 = vst.msk [vmem:[%s3438_s6 + $0xcc] sm:$0xf] %vm1983_vm3, %v1982_v4 }

// kernel: net_forward.4
= control target key start
LH: loop header
LB: loop body
LE: loop exit
PB: predicated region body
PF: predicated region fallthrough
CT: control target
= control target key end

     0   :  { %vm157_vm0 = vcmask 1042432   ;;  %vm144_vm1 = vcmask 179200   ;;  %vm613_vm2 = vcmask 125952   ;;  %s1244_s4 = inlined_call_operand.vmem [shape: bf16[150,16], index: 4, kind: input, shape index: {}]   ;;  %s1245_s1 = inlined_call_operand.vmem [shape: bf16[64,150], index: 1, kind: input, shape index: {}]   ;;  %s1246_s0 = inlined_call_operand.vmem [shape: bf16[64,150], index: 0, kind: input, shape index: {}]   ;;  %s1247_s2 = inlined_call_operand.vmem [shape: bf16[64,150], index: 2, kind: input, shape index: {}]   ;;  %s1248_s3 = inlined_call_operand.vmem [shape: bf16[64,150], index: 3, kind: input, shape index: {}]   ;;  %s1249_s5 = inlined_call_operand.vmem [shape: f32[1,16], index: 5, kind: input, shape index: {}]   ;;  %s1250_s6 = inlined_call_operand.vmem [shape: bf16[64,16], index: 6, kind: output, shape index: {}]  }
   0x1   :  { %v886_v0 = vld [vmem:[%s1244_s4 + $0x38] sm:$0xff]  ;;  %v42_v1 = vld [vmem:[%s1244_s4 + $0x48] sm:$0x7]  ;;  %v896_v3 = vld [vmem:[%s1244_s4 + $0x30] sm:$0xff] }
   0x2   :  { %v124_v2 = vunpack.c.l.b16 %v42_v1  ;;  %161 = vmatpush.bf16.msra.mxu0 %v886_v0  ;;  %275 = vmatpush.bf16.msra.mxu2 %v886_v0  ;;  %v814_v6 = vld [vmem:[%s1244_s4 + $0x40] sm:$0xff]  ;;  %v905_v7 = vld [vmem:[%s1244_s4 + $0x28] sm:$0xff]  ;;  %v809_v15 = vld [vmem:[%s1244_s4 + $0x18] sm:$0xff] }
   0x3   :  { %v823_v8 = vld [vmem:[%s1245_s1 + $0x4] sm:$0xf]  ;;  %v702_v9 = vld [vmem:[%s1245_s1 + $0x8] sm:$0xf0]  ;;  %v808_v16 = vld [vmem:[%s1244_s4 + $0x10] sm:$0xff] }
   0x4   :  { %v134_v4 = vpack.c.b16 %v124_v2, %v124_v2  ;;  %v815_v10 = vld [vmem:[%s1246_s0 + $0x4] sm:$0xf]  ;;  %v630_v11 = vld [vmem:[%s1246_s0 + $0x8] sm:$0xf0]  ;;  %v705_v12 = vor.u32 %v823_v8, %v702_v9  ;;  %v825_v18 = vld [vmem:[%s1245_s1 + $0x14] sm:$0xf] }
   0x5   :  { %v810_v13 = vld [vmem:[%s1244_s4 + $0x20] sm:$0xff]  ;;  %v633_v14 = vor.u32 %v815_v10, %v630_v11  ;;  %v807_v17 = vld [vmem:[%s1244_s4 + $0x8] sm:$0xff]  ;;  %v710_v19 = vld [vmem:[%s1245_s1 + $0x18] sm:$0xf0] }
   0x6   :  { %v159_v5 = vsel %vm157_vm0, %v134_v4, 0  ;;  %162 = vmatpush.bf16.msra.mxu0 %v896_v3  ;;  %276 = vmatpush.bf16.msra.mxu2 %v896_v3  ;;  %v817_v20 = vld [vmem:[%s1246_s0 + $0x14] sm:$0xf]  ;;  %v638_v21 = vld [vmem:[%s1246_s0 + $0x18] sm:$0xf0]  ;;  %v713_v22 = vor.u32 %v825_v18, %v710_v19  ;;  %v806_v23 = vld [vmem:[%s1244_s4] sm:$0xff] }
   0x7   :  { %310 = vmatpush.bf16.msra.mxu3 %v159_v5  ;;  %196 = vmatpush.bf16.msra.mxu1 %v159_v5  ;;  %v628_v24 = vld [vmem:[%s1246_s0] sm:$0xf]  ;;  %v816_v25 = vld [vmem:[%s1246_s0 + $0x4] sm:$0xf0]  ;;  %v641_v26 = vor.u32 %v817_v20, %v638_v21  ;;  %v827_v31 = vld [vmem:[%s1245_s1 + $0x24] sm:$0xf] }
   0x8   :  { %v700_v27 = vld [vmem:[%s1245_s1] sm:$0xf]  ;;  %v824_v28 = vld [vmem:[%s1245_s1 + $0x4] sm:$0xf0]  ;;  %v629_v29 = vor.u32 %v816_v25, %v628_v24  ;;  %v718_v32 = vld [vmem:[%s1245_s1 + $0x28] sm:$0xf0] }
   0x9   :  { %v701_v30 = vor.u32 %v824_v28, %v700_v27  ;;  %v819_v33 = vld [vmem:[%s1246_s0 + $0x24] sm:$0xf]  ;;  %v646_v34 = vld [vmem:[%s1246_s0 + $0x28] sm:$0xf0]  ;;  %v721_v35 = vor.u32 %v827_v31, %v718_v32  ;;  %v636_v36 = vld [vmem:[%s1246_s0 + $0x10] sm:$0xf] }
   0xa   :  { %163 = vmatpush.bf16.msra.mxu0 %v905_v7  ;;  %277 = vmatpush.bf16.msra.mxu2 %v905_v7  ;;  %v818_v37 = vld [vmem:[%s1246_s0 + $0x14] sm:$0xf0]  ;;  %v649_v38 = vor.u32 %v819_v33, %v646_v34  ;;  %v708_v39 = vld [vmem:[%s1245_s1 + $0x10] sm:$0xf]  ;;  %v829_v43 = vld [vmem:[%s1245_s1 + $0x34] sm:$0xf] }
   0xb   :  { %311 = vmatpush.bf16.msra.mxu3 %v814_v6  ;;  %197 = vmatpush.bf16.msra.mxu1 %v814_v6  ;;  %v826_v40 = vld [vmem:[%s1245_s1 + $0x14] sm:$0xf0]  ;;  %v637_v41 = vor.u32 %v818_v37, %v636_v36  ;;  %v726_v44 = vld [vmem:[%s1245_s1 + $0x38] sm:$0xf0]  ;;  %v821_v45 = vld [vmem:[%s1246_s0 + $0x34] sm:$0xf] }
   0xc   :  { %v709_v42 = vor.u32 %v826_v40, %v708_v39  ;;  %v654_v46 = vld [vmem:[%s1246_s0 + $0x38] sm:$0xf0]  ;;  %v729_v47 = vor.u32 %v829_v43, %v726_v44  ;;  %v644_v48 = vld [vmem:[%s1246_s0 + $0x20] sm:$0xf]  ;;  %v820_v49 = vld [vmem:[%s1246_s0 + $0x24] sm:$0xf0] }
   0xd   :  { %v657_v50 = vor.u32 %v821_v45, %v654_v46  ;;  %v716_v51 = vld [vmem:[%s1245_s1 + $0x20] sm:$0xf]  ;;  %v828_v52 = vld [vmem:[%s1245_s1 + $0x24] sm:$0xf0]  ;;  %v645_v53 = vor.u32 %v820_v49, %v644_v48  ;;  %v831_v55 = vld [vmem:[%s1247_s2 + $0x4] sm:$0xf] }
   0xe   :  { %730 = vmatmul.msk.bf16.vlgmr.msra.gmra.mxu3 %vm144_vm1, %v705_v12  ;;  %164 = vmatpush.bf16.msra.mxu0 %v810_v13  ;;  %v717_v54 = vor.u32 %v828_v52, %v716_v51  ;;  %v738_v56 = vld [vmem:[%s1247_s2 + $0x8] sm:$0xf0]  ;;  %v736_v57 = vld [vmem:[%s1247_s2] sm:$0xf]  ;;  %v832_v58 = vld [vmem:[%s1247_s2 + $0x4] sm:$0xf0] }
   0xf   :  { %432 = vmatpush.bf16.msrb.mxu3 %v159_v5  ;;  %397 = vmatpush.bf16.msrb.mxu1 %v886_v0  ;;  %v741_v59 = vor.u32 %v831_v55, %v738_v56  ;;  %v652_v60 = vld [vmem:[%s1246_s0 + $0x30] sm:$0xf]  ;;  %v822_v61 = vld [vmem:[%s1246_s0 + $0x34] sm:$0xf0]  ;;  %v737_v62 = vor.u32 %v832_v58, %v736_v57  ;;  %v746_v4 = vld [vmem:[%s1247_s2 + $0x18] sm:$0xf0] }
  0x10   :  { %694 = vmatmul.msk.bf16.vlgmr.msra.gmra.mxu1 %vm144_vm1, %v633_v14  ;;  %278 = vmatpush.bf16.msra.mxu2 %v810_v13  ;;  %v724_v63 = vld [vmem:[%s1245_s1 + $0x30] sm:$0xf]  ;;  %v653_v1 = vor.u32 %v822_v61, %v652_v60  ;;  %v772_v8 = vld [vmem:[%s1248_s3] sm:$0xf]  ;;  %v840_v9 = vld [vmem:[%s1248_s3 + $0x4] sm:$0xf0] }
  0x11   :  { %v839_v11 = vld [vmem:[%s1248_s3 + $0x4] sm:$0xf]  ;;  %v774_v12 = vld [vmem:[%s1248_s3 + $0x8] sm:$0xf0]  ;;  %v836_v18 = vld [vmem:[%s1247_s2 + $0x24] sm:$0xf0] }
  0x12   :  { %165 = vmatpush.bf16.msra.mxu0 %v809_v15  ;;  %v777_v14 = vor.u32 %v839_v11, %v774_v12  ;;  %v780_v20 = vld [vmem:[%s1248_s3 + $0x10] sm:$0xf]  ;;  %v842_v21 = vld [vmem:[%s1248_s3 + $0x14] sm:$0xf0]  ;;  %v782_v24 = vld [vmem:[%s1248_s3 + $0x18] sm:$0xf0] }
  0x13   :  { %398 = vmatpush.bf16.msrb.mxu1 %v896_v3  ;;  %433 = vmatpush.bf16.msrb.mxu3 %v814_v6  ;;  %v781_v25 = vor.u32 %v842_v21, %v780_v20  ;;  %v837_v27 = vld [vmem:[%s1247_s2 + $0x34] sm:$0xf]  ;;  %v762_v28 = vld [vmem:[%s1247_s2 + $0x38] sm:$0xf0]  ;;  %v788_v32 = vld [vmem:[%s1248_s3 + $0x20] sm:$0xf] }
  0x14   :  { %279 = vmatpush.bf16.msra.mxu2 %v809_v15  ;;  %v765_v31 = vor.u32 %v837_v27, %v762_v28  ;;  %v844_v33 = vld [vmem:[%s1248_s3 + $0x24] sm:$0xf0]  ;;  %v790_v36 = vld [vmem:[%s1248_s3 + $0x28] sm:$0xf0]  ;;  %v796_v39 = vld [vmem:[%s1248_s3 + $0x30] sm:$0xf] }
  0x15   :  { %v789_v37 = vor.u32 %v844_v33, %v788_v32  ;;  %v846_v40 = vld [vmem:[%s1248_s3 + $0x34] sm:$0xf0]  ;;  %v798_v43 = vld [vmem:[%s1248_s3 + $0x38] sm:$0xf0]  ;;  %v1182_v27 = vld [vmem:[%s1249_s5] ss:$0 sm:$0xff] }
  0x16   :  { %166 = vmatpush.bf16.msra.mxu0 %v808_v16  ;;  %v797_v44 = vor.u32 %v846_v40, %v796_v39 }
  0x17   :  { %399 = vmatpush.bf16.msrb.mxu1 %v905_v7 }
  0x18   :  { %280 = vmatpush.bf16.msra.mxu2 %v808_v16 }
  0x1a   :  { %167 = vmatpush.bf16.msra.mxu0 %v807_v17 }
  0x1b   :  { %400 = vmatpush.bf16.msrb.mxu1 %v810_v13 }
  0x1c   :  { %281 = vmatpush.bf16.msra.mxu2 %v807_v17 }
  0x1e   :  { %731 = vmatmul.msk.bf16.gmra.mxu3 %vm144_vm1, %v713_v22  ;;  %168 = vmatpush.bf16.msra.mxu0 %v806_v23 }
  0x1f   :  { %401 = vmatpush.bf16.msrb.mxu1 %v809_v15 }
  0x20   :  { %695 = vmatmul.msk.bf16.gmra.mxu1 %vm144_vm1, %v641_v26  ;;  %282 = vmatpush.bf16.msra.mxu2 %v806_v23 }
  0x21   :  { %169 = vmatmul.bf16.vlgmr.msra.gmra.mxu0 %v629_v29  ;;  %v760_v29 = vld [vmem:[%s1247_s2 + $0x30] sm:$0xf] }
  0x22   :  { %519 = vmatpush.bf16.msrb.mxu0 %v886_v0  ;;  %v830_v0 = vld [vmem:[%s1245_s1 + $0x34] sm:$0xf0] }
  0x23   :  { %402 = vmatpush.bf16.msrb.mxu1 %v808_v16  ;;  %283 = vmatmul.bf16.vlgmr.msra.gmra.mxu2 %v701_v30  ;;  %v725_v2 = vor.u32 %v830_v0, %v724_v63  ;;  %v838_v30 = vld [vmem:[%s1247_s2 + $0x34] sm:$0xf0] }
  0x24   :  { %554 = vmatpush.bf16.msrb.mxu2 %v159_v5  ;;  %v744_v5 = vld [vmem:[%s1247_s2 + $0x10] sm:$0xf]  ;;  %v761_v34 = vor.u32 %v838_v30, %v760_v29 }
  0x26   :  { %520 = vmatpush.bf16.msrb.mxu0 %v896_v3  ;;  %v833_v3 = vld [vmem:[%s1247_s2 + $0x14] sm:$0xf] }
  0x27   :  { %403 = vmatpush.bf16.msrb.mxu1 %v807_v17 }
  0x28   :  { %555 = vmatpush.bf16.msrb.mxu2 %v814_v6  ;;  %v834_v6 = vld [vmem:[%s1247_s2 + $0x14] sm:$0xf0] }
  0x29   :  { %v745_v10 = vor.u32 %v834_v6, %v744_v5 }
  0x2a   :  { %521 = vmatpush.bf16.msrb.mxu0 %v905_v7  ;;  %v749_v7 = vor.u32 %v833_v3, %v746_v4 }
  0x2b   :  { %404 = vmatpush.bf16.msrb.mxu1 %v806_v23 }
  0x2e   :  { %522 = vmatpush.bf16.msrb.mxu0 %v810_v13  ;;  %732 = vmatmul.msk.bf16.gmra.mxu3 %vm144_vm1, %v721_v35  ;;  %v773_v13 = vor.u32 %v840_v9, %v772_v8  ;;  %v843_v35 = vld [vmem:[%s1248_s3 + $0x24] sm:$0xf] }
  0x30   :  { %696 = vmatmul.msk.bf16.gmra.mxu1 %vm144_vm1, %v649_v38  ;;  %v793_v38 = vor.u32 %v843_v35, %v790_v36 }
  0x31   :  { %174 = vmatmul.bf16.gmra.mxu0 %v637_v41 }
  0x32   :  { %523 = vmatpush.bf16.msrb.mxu0 %v809_v15  ;;  %v835_v15 = vld [vmem:[%s1247_s2 + $0x24] sm:$0xf] }
  0x33   :  { %288 = vmatmul.bf16.gmra.mxu2 %v709_v42  ;;  %v845_v42 = vld [vmem:[%s1248_s3 + $0x34] sm:$0xf] }
  0x34   :  { %v801_v45 = vor.u32 %v845_v42, %v798_v43 }
  0x36   :  { %524 = vmatpush.bf16.msrb.mxu0 %v808_v16  ;;  %v754_v16 = vld [vmem:[%s1247_s2 + $0x28] sm:$0xf0] }
  0x37   :  { %v757_v19 = vor.u32 %v835_v15, %v754_v16 }
  0x3a   :  { %525 = vmatpush.bf16.msrb.mxu0 %v807_v17  ;;  %v752_v17 = vld [vmem:[%s1247_s2 + $0x20] sm:$0xf] }
  0x3b   :  { %v753_v22 = vor.u32 %v836_v18, %v752_v17 }
  0x3e   :  { %526 = vmatpush.bf16.msrb.mxu0 %v806_v23  ;;  %733 = vmatmul.msk.bf16.gmra.mxu3 %vm144_vm1, %v729_v47  ;;  %v841_v23 = vld [vmem:[%s1248_s3 + $0x14] sm:$0xf] }
  0x3f   :  { %v785_v26 = vor.u32 %v841_v23, %v782_v24 }
  0x40   :  { %697 = vmatmul.msk.bf16.gmra.mxu1 %vm144_vm1, %v657_v50 }
  0x41   :  { %179 = vmatmul.bf16.gmra.mxu0 %v645_v53 }
  0x43   :  { %293 = vmatmul.bf16.gmra.mxu2 %v717_v54 }
  0x4e   :  { %766 = vmatmul.msk.bf16.vlgmr.msrb.gmra.mxu3 %vm144_vm1, %v741_v59 }
  0x50   :  { %405 = vmatmul.bf16.vlgmr.msrb.gmra.mxu1 %v737_v62 }
  0x51   :  { %184 = vmatmul.bf16.gmra.mxu0 %v653_v1 }
  0x53   :  { %298 = vmatmul.bf16.gmra.mxu2 %v725_v2 }
  0x5e   :  { %767 = vmatmul.msk.bf16.gmra.mxu3 %vm144_vm1, %v749_v7 }
  0x60   :  { %410 = vmatmul.bf16.gmra.mxu1 %v745_v10 }
  0x61   :  { %527 = vmatmul.bf16.vlgmr.msrb.gmra.mxu0 %v773_v13 }
  0x63   :  { %802 = vmatmul.msk.bf16.vlgmr.msrb.gmra.mxu2 %vm144_vm1, %v777_v14 }
  0x6e   :  { %768 = vmatmul.msk.bf16.gmra.mxu3 %vm144_vm1, %v757_v19 }
  0x70   :  { %415 = vmatmul.bf16.gmra.mxu1 %v753_v22 }
  0x71   :  { %532 = vmatmul.bf16.gmra.mxu0 %v781_v25 }
  0x73   :  { %803 = vmatmul.msk.bf16.gmra.mxu2 %vm144_vm1, %v785_v26 }
  0x7e   :  { %769 = vmatmul.msk.bf16.gmra.mxu3 %vm144_vm1, %v765_v31 }
  0x80   :  { %420 = vmatmul.bf16.gmra.mxu1 %v761_v34 }
  0x81   :  { %537 = vmatmul.bf16.gmra.mxu0 %v789_v37 }
  0x83   :  { %804 = vmatmul.msk.bf16.gmra.mxu2 %vm144_vm1, %v793_v38 }
  0x8d   :  { %v199_v41 = vpop.f32.mrf.mxu1 }
  0x91   :  { %v313_v46 = vpop.f32.mrf.mxu3  ;;  %542 = vmatmul.bf16.gmra.mxu0 %v797_v44 }
  0x93   :  { %805 = vmatmul.msk.bf16.gmra.mxu2 %vm144_vm1, %v801_v45 }
  0x95   :  { %v201_v47 = vpop.f32.mrf.mxu1 }
  0x99   :  { %v315_v48 = vpop.f32.mrf.mxu3 }
  0x9d   :  { %v1139_v49 = vpop.f32.mrf.mxu1 }
  0x9e   :  { %v170_v50 = vpop.f32.mrf.mxu0 }
  0x9f   :  { %v200_v19 = vadd.f32 %v199_v41, %v170_v50 }
  0xa1   :  { %v318_v51 = vpop.f32.mrf.mxu3 }
  0xa5   :  { %v1141_v52 = vpop.f32.mrf.mxu1 }
  0xa6   :  { %v284_v53 = vpop.f32.mrf.mxu2  ;;  %v172_v54 = vpop.f32.mrf.mxu0 }
  0xa7   :  { %v314_v18 = vadd.f32 %v313_v46, %v284_v53  ;;  %v202_v31 = vadd.f32 %v201_v47, %v172_v54 }
  0xa9   :  { %v1143_v55 = vpop.f32.mrf.mxu3  ;;  %v333_v21 = vmax.f32 %v200_v19, %v314_v18 }
  0xad   :  { %v1145_v56 = vpop.f32.mrf.mxu1 }
  0xae   :  { %v286_v57 = vpop.f32.mrf.mxu2  ;;  %v175_v58 = vpop.f32.mrf.mxu0 }
  0xaf   :  { %v316_v29 = vadd.f32 %v315_v48, %v286_v57  ;;  %v205_v45 = vadd.f32 %v1139_v49, %v175_v58 }
  0xb1   :  { %v1147_v59 = vpop.f32.mrf.mxu3  ;;  %v334_v34 = vmax.f32 %v202_v31, %v316_v29 }
  0xb5   :  { %v1149_v60 = vpop.f32.mrf.mxu1 }
  0xb6   :  { %v289_v61 = vpop.f32.mrf.mxu2  ;;  %v1151_v62 = vpop.f32.mrf.mxu0 }
  0xb7   :  { %v319_v43 = vadd.f32 %v318_v51, %v289_v61  ;;  %v207_v58 = vadd.f32 %v1141_v52, %v1151_v62 }
  0xb9   :  { %v1153_v63 = vpop.f32.mrf.mxu3  ;;  %v335_v48 = vmax.f32 %v205_v45, %v319_v43 }
  0xbd   :  { %v1155_v0 = vpop.f32.mrf.mxu1 }
  0xbe   :  { %v291_v1 = vpop.f32.mrf.mxu2  ;;  %v1157_v2 = vpop.f32.mrf.mxu0 }
  0xbf   :  { %v321_v51 = vadd.f32 %v1143_v55, %v291_v1  ;;  %v210_v52 = vadd.f32 %v1145_v56, %v1157_v2 }
  0xc1   :  { %v1159_v3 = vpop.f32.mrf.mxu3  ;;  %v336_v18 = vmax.f32 %v207_v58, %v321_v51 }
  0xc5   :  { %v1165_v6 = vpop.f32.mrf.mxu1 }
  0xc6   :  { %v1161_v4 = vpop.f32.mrf.mxu2  ;;  %v1163_v5 = vpop.f32.mrf.mxu0 }
  0xc9   :  { %v1167_v7 = vpop.f32.mrf.mxu3 }
  0xcd   :  { %v406_v10 = vpop.f32.mrf.mxu1 }
  0xce   :  { %v1169_v8 = vpop.f32.mrf.mxu2  ;;  %v1171_v9 = vpop.f32.mrf.mxu0 }
  0xd1   :  { %v435_v11 = vpop.f32.mrf.mxu3 }
  0xd2   :  { %v436_v20 = vadd.f32 %v435_v11, %v406_v10 }
  0xd4   :  { %v455_v25 = vmax.f32 %v333_v21, %v436_v20 }
  0xd5   :  { %v408_v14 = vpop.f32.mrf.mxu1 }
  0xd6   :  { %v1173_v12 = vpop.f32.mrf.mxu2  ;;  %v1175_v13 = vpop.f32.mrf.mxu0 }
  0xd7   :  { %v329_v43 = vadd.f32 %v1159_v3, %v1173_v12 }
  0xd9   :  { %v437_v15 = vpop.f32.mrf.mxu3 }
  0xda   :  { %v438_v32 = vadd.f32 %v437_v15, %v408_v14 }
  0xdc   :  { %v456_v37 = vmax.f32 %v334_v34, %v438_v32  ;;  %v212_v34 = vadd.f32 %v1149_v60, %v1163_v5  ;;  %v215_v5 = vadd.f32 %v1155_v0, %v1171_v9  ;;  %v217_v9 = vadd.f32 %v1165_v6, %v1175_v13 }
  0xdd   :  { %v411_v22 = vpop.f32.mrf.mxu1 }
  0xde   :  { %v1177_v16 = vpop.f32.mrf.mxu2  ;;  %v528_v17 = vpop.f32.mrf.mxu0 }
  0xe1   :  { %v440_v23 = vpop.f32.mrf.mxu3 }
  0xe2   :  { %v441_v46 = vadd.f32 %v440_v23, %v411_v22  ;;  %v324_v23 = vadd.f32 %v1147_v59, %v1161_v4  ;;  %v326_v4 = vadd.f32 %v1153_v63, %v1169_v8 }
  0xe4   :  { %v457_v54 = vmax.f32 %v335_v48, %v441_v46  ;;  %v337_v29 = vmax.f32 %v210_v52, %v324_v23 }
  0xe5   :  { %v413_v39 = vpop.f32.mrf.mxu1 }
  0xe6   :  { %v557_v24 = vpop.f32.mrf.mxu2  ;;  %v530_v28 = vpop.f32.mrf.mxu0 }
  0xe7   :  { %v558_v26 = vadd.f32 %v557_v24, %v528_v17 }
  0xe9   :  { %v577_v30 = vmax.f32 %v455_v25, %v558_v26  ;;  %v442_v42 = vpop.f32.mrf.mxu3 }
  0xea   :  { %v443_v15 = vadd.f32 %v442_v42, %v413_v39 }
  0xeb   :  { %v589_v33 = vadd.f32 %v1182_v27, %v577_v30 }
  0xec   :  { %v458_v21 = vmax.f32 %v336_v18, %v443_v15 }
  0xed   :  { %v597_v35 = vmax.f32 %v589_v33, 0.0  ;;  %v416_v61 = vpop.f32.mrf.mxu1 }
  0xee   :  { %v559_v36 = vpop.f32.mrf.mxu2  ;;  %v533_v41 = vpop.f32.mrf.mxu0 }
  0xef   :  { %v605_v38 = vpack.c.bf16 %v597_v35, %v597_v35  ;;  %v560_v40 = vadd.f32 %v559_v36, %v530_v28 }
  0xf1   :  { %614 = vst.msk [vmem:[%s1250_s6] sm:$0xf] %vm613_vm2, %v605_v38  ;;  %v578_v44 = vmax.f32 %v456_v37, %v560_v40  ;;  %v445_v49 = vpop.f32.mrf.mxu3  ;;  %v338_v37 = vmax.f32 %v212_v34, %v326_v4 }
  0xf2   :  { %v446_v62 = vadd.f32 %v445_v49, %v416_v61 }
  0xf3   :  { %v590_v47 = vadd.f32 %v1182_v27, %v578_v44 }
  0xf4   :  { %v459_v32 = vmax.f32 %v337_v29, %v446_v62 }
  0xf5   :  { %v598_v50 = vmax.f32 %v590_v47, 0.0  ;;  %v418_v25 = vpop.f32.mrf.mxu1  ;;  %v339_v47 = vmax.f32 %v215_v5, %v329_v43 }
  0xf6   :  { %v562_v53 = vpop.f32.mrf.mxu2  ;;  %v535_v11 = vpop.f32.mrf.mxu0 }
  0xf7   :  { %v606_v57 = vpack.c.bf16 %v598_v50, %v598_v50  ;;  %v563_v10 = vadd.f32 %v562_v53, %v533_v41 }
  0xf9   :  { %615 = vst.msk [vmem:[%s1250_s6 + $0x4] sm:$0xf] %vm613_vm2, %v606_v57  ;;  %v579_v14 = vmax.f32 %v457_v54, %v563_v10  ;;  %v447_v28 = vpop.f32.mrf.mxu3  ;;  %v331_v10 = vadd.f32 %v1167_v7, %v1177_v16 }
  0xfa   :  { %v448_v35 = vadd.f32 %v447_v28, %v418_v25 }
  0xfb   :  { %v591_v17 = vadd.f32 %v1182_v27, %v579_v14  ;;  %v340_v61 = vmax.f32 %v217_v9, %v331_v10 }
  0xfc   :  { %v460_v42 = vmax.f32 %v338_v37, %v448_v35 }
  0xfd   :  { %v599_v19 = vmax.f32 %v591_v17, 0.0  ;;  %v421_v38 = vpop.f32.mrf.mxu1 }
  0xfe   :  { %v564_v20 = vpop.f32.mrf.mxu2  ;;  %v538_v1 = vpop.f32.mrf.mxu0 }
  0xff   :  { %v607_v22 = vpack.c.bf16 %v599_v19, %v599_v19  ;;  %v565_v55 = vadd.f32 %v564_v20, %v535_v11 }
 0x101   :  { %616 = vst.msk [vmem:[%s1250_s6 + $0x8] sm:$0xf] %vm613_vm2, %v607_v22  ;;  %v580_v24 = vmax.f32 %v458_v21, %v565_v55  ;;  %v450_v40 = vpop.f32.mrf.mxu3 }
 0x102   :  { %v451_v44 = vadd.f32 %v450_v40, %v421_v38 }
 0x103   :  { %v592_v26 = vadd.f32 %v1182_v27, %v580_v24 }
 0x104   :  { %v461_v53 = vmax.f32 %v339_v47, %v451_v44 }
 0x105   :  { %v600_v30 = vmax.f32 %v592_v26, 0.0  ;;  %v423_v3 = vpop.f32.mrf.mxu1 }
 0x106   :  { %v567_v31 = vpop.f32.mrf.mxu2  ;;  %v540_v2 = vpop.f32.mrf.mxu0 }
 0x107   :  { %v608_v33 = vpack.c.bf16 %v600_v30, %v600_v30  ;;  %v568_v59 = vadd.f32 %v567_v31, %v538_v1 }
 0x109   :  { %617 = vst.msk [vmem:[%s1250_s6 + $0xc] sm:$0xf] %vm613_vm2, %v608_v33  ;;  %v581_v56 = vmax.f32 %v459_v32, %v568_v59  ;;  %v452_v12 = vpop.f32.mrf.mxu3 }
 0x10a   :  { %v453_v11 = vadd.f32 %v452_v12, %v423_v3 }
 0x10b   :  { %v593_v36 = vadd.f32 %v1182_v27, %v581_v56 }
 0x10c   :  { %v462_v15 = vmax.f32 %v340_v61, %v453_v11 }
 0x10d   :  { %v601_v39 = vmax.f32 %v593_v36, 0.0 }
 0x10e   :  { %v569_v41 = vpop.f32.mrf.mxu2  ;;  %v543_v46 = vpop.f32.mrf.mxu0 }
 0x10f   :  { %v609_v63 = vpack.c.bf16 %v601_v39, %v601_v39  ;;  %v570_v8 = vadd.f32 %v569_v41, %v540_v2 }
 0x111   :  { %618 = vst.msk [vmem:[%s1250_s6 + $0x10] sm:$0xf] %vm613_vm2, %v609_v63  ;;  %v582_v60 = vmax.f32 %v460_v42, %v570_v8 }
 0x113   :  { %v594_v45 = vadd.f32 %v1182_v27, %v582_v60 }
 0x115   :  { %v602_v48 = vmax.f32 %v594_v45, 0.0 }
 0x116   :  { %v572_v50 = vpop.f32.mrf.mxu2  ;;  %v545_v49 = vpop.f32.mrf.mxu0 }
 0x117   :  { %v610_v54 = vpack.c.bf16 %v602_v48, %v602_v48  ;;  %v573_v57 = vadd.f32 %v572_v50, %v543_v46 }
 0x119   :  { %619 = vst.msk [vmem:[%s1250_s6 + $0x14] sm:$0xf] %vm613_vm2, %v610_v54  ;;  %v583_v0 = vmax.f32 %v461_v53, %v573_v57 }
 0x11b   :  { %v595_v51 = vadd.f32 %v1182_v27, %v583_v0 }
 0x11d   :  { %v603_v14 = vmax.f32 %v595_v51, 0.0 }
 0x11e   :  { %v574_v58 = vpop.f32.mrf.mxu2 }
 0x11f   :  { %v611_v17 = vpack.c.bf16 %v603_v14, %v603_v14  ;;  %v575_v18 = vadd.f32 %v574_v58, %v545_v49 }
 0x121   :  { %620 = vst.msk [vmem:[%s1250_s6 + $0x18] sm:$0xf] %vm613_vm2, %v611_v17  ;;  %v584_v7 = vmax.f32 %v462_v15, %v575_v18 }
 0x123   :  { %v596_v16 = vadd.f32 %v1182_v27, %v584_v7 }
 0x125   :  { %v604_v19 = vmax.f32 %v596_v16, 0.0 }
 0x127   :  { %v612_v6 = vpack.c.bf16 %v604_v19, %v604_v19 }
 0x129   :  { %621 = vst.msk [vmem:[%s1250_s6 + $0x1c] sm:$0xf] %vm613_vm2, %v612_v6 }

// kernel: net_forward.5
= control target key start
LH: loop header
LB: loop body
LE: loop exit
PB: predicated region body
PF: predicated region fallthrough
CT: control target
= control target key end

     0   :  { %vm254_vm0 = vcmask 130048   ;;  %vm385_vm1 = vcmask 1043456   ;;  %vm458_vm2 = vcmask 1041408   ;;  %vm381_vm3 = vcmask 982016   ;;  %s890_s1 = inlined_call_operand.vmem [shape: bf16[400,120], index: 1, kind: input, shape index: {}]   ;;  %s891_s0 = inlined_call_operand.vmem [shape: bf16[16,400], index: 0, kind: input, shape index: {}]   ;;  %s892_s3 = inlined_call_operand.vmem [shape: bf16[120,84], index: 3, kind: input, shape index: {}]   ;;  %s893_s2 = inlined_call_operand.vmem [shape: f32[1,120], index: 2, kind: input, shape index: {}]   ;;  %s894_s4 = inlined_call_operand.vmem [shape: f32[1,84], index: 4, kind: input, shape index: {}]   ;;  %s895_s5 = inlined_call_operand.vmem [shape: bf16[84,10], index: 5, kind: input, shape index: {}]   ;;  %s896_s6 = inlined_call_operand.vmem [shape: f32[1,10], index: 6, kind: input, shape index: {}]   ;;  %s897_s7 = inlined_call_operand.vmem [shape: f32[16,10], index: 7, kind: output, shape index: {}]  }
   0x1   :  { %v661_v0 = vld [vmem:[%s890_s1 + $0x38] sm:$0xff]  ;;  %v660_v3 = vld [vmem:[%s890_s1 + $0x30] sm:$0xff]  ;;  %v659_v6 = vld [vmem:[%s890_s1 + $0x28] sm:$0xff]  ;;  %vm454_vm4 = vcmask 687104   ;;  %vm476_vm5 = vcmask 80896  }
   0x2   :  { %v669_v1 = vld [vmem:[%s890_s1 + $0x78] sm:$0xff]  ;;  %258 = vmatpush.bf16.msra.mxu0 %v661_v0  ;;  %v668_v4 = vld [vmem:[%s890_s1 + $0x70] sm:$0xff]  ;;  %v667_v7 = vld [vmem:[%s890_s1 + $0x68] sm:$0xff] }
   0x3   :  { %v677_v2 = vld [vmem:[%s890_s1 + $0xb8] sm:$0xff]  ;;  %272 = vmatpush.bf16.msra.mxu1 %v669_v1  ;;  %v676_v5 = vld [vmem:[%s890_s1 + $0xb0] sm:$0xff]  ;;  %v678_v8 = vld [vmem:[%s890_s1 + $0xc0] sm:$0xff] }
   0x4   :  { %286 = vmatpush.bf16.msra.mxu2 %v677_v2  ;;  %v675_v9 = vld [vmem:[%s890_s1 + $0xa8] sm:$0xff]  ;;  %v495_v11 = vld [vmem:[%s891_s0 + $0x18] sm:$0xf0]  ;;  %307 = vmatpush.bf16.msra.mxu3 %v678_v8  ;;  %v658_v13 = vld [vmem:[%s890_s1 + $0x20] sm:$0xff] }
   0x5   :  { %v651_v10 = vld [vmem:[%s891_s0 + $0xc] sm:$0xf]  ;;  %v666_v14 = vld [vmem:[%s890_s1 + $0x60] sm:$0xff]  ;;  %v331_v16 = vld [vmem:[%s892_s3 + $0x38] sm:$0xf] }
   0x6   :  { %259 = vmatpush.bf16.msra.mxu0 %v660_v3  ;;  %v498_v12 = vor.u32 %v651_v10, %v495_v11  ;;  %v674_v15 = vld [vmem:[%s890_s1 + $0xa0] sm:$0xff]  ;;  %v365_v17 = vunpack.c.l.b16 %v331_v16  ;;  %v657_v18 = vld [vmem:[%s890_s1 + $0x18] sm:$0xff]  ;;  %v685_v23 = vld [vmem:[%s892_s3 + $0x30] sm:$0xff] }
   0x7   :  { %273 = vmatpush.bf16.msra.mxu1 %v668_v4  ;;  %v665_v19 = vld [vmem:[%s890_s1 + $0x58] sm:$0xff]  ;;  %v656_v24 = vld [vmem:[%s890_s1 + $0x10] sm:$0xff]  ;;  %v655_v27 = vld [vmem:[%s890_s1 + $0x8] sm:$0xff] }
   0x8   :  { %287 = vmatpush.bf16.msra.mxu2 %v676_v5  ;;  %599 = vmatmul.msk.bf16.vlgmr.msra.gmra.mxu3 %vm254_vm0, %v498_v12  ;;  %v373_v20 = vpack.c.b16 %v365_v17, %v365_v17  ;;  %v673_v21 = vld [vmem:[%s890_s1 + $0x98] sm:$0xff]  ;;  %v664_v25 = vld [vmem:[%s890_s1 + $0x50] sm:$0xff]  ;;  %v663_v28 = vld [vmem:[%s890_s1 + $0x48] sm:$0xff] }
   0x9   :  { %v672_v26 = vld [vmem:[%s890_s1 + $0x90] sm:$0xff]  ;;  %v671_v29 = vld [vmem:[%s890_s1 + $0x88] sm:$0xff]  ;;  %v654_v30 = vld [vmem:[%s890_s1] sm:$0xff] }
   0xa   :  { %260 = vmatpush.bf16.msra.mxu0 %v659_v6  ;;  %v387_v22 = vsel %vm385_vm1, %v373_v20, 0  ;;  %v662_v31 = vld [vmem:[%s890_s1 + $0x40] sm:$0xff]  ;;  %v652_v33 = vld [vmem:[%s891_s0 + $0xc] sm:$0xf0]  ;;  %v487_v35 = vld [vmem:[%s891_s0 + $0x10] sm:$0xf0] }
   0xb   :  { %274 = vmatpush.bf16.msra.mxu1 %v667_v7  ;;  %389 = vmatpush.bf16.msrb.mxu3 %v387_v22  ;;  %v485_v32 = vld [vmem:[%s891_s0] sm:$0xf]  ;;  %v650_v34 = vld [vmem:[%s891_s0 + $0x4] sm:$0xf]  ;;  %v493_v37 = vld [vmem:[%s891_s0 + $0x8] sm:$0xf] }
   0xc   :  { %288 = vmatpush.bf16.msra.mxu2 %v675_v9  ;;  %v670_v36 = vld [vmem:[%s890_s1 + $0x80] sm:$0xff]  ;;  %v653_v38 = vld [vmem:[%s891_s0 + $0x14] sm:$0xf0]  ;;  %v486_v39 = vor.u32 %v652_v33, %v485_v32  ;;  %v490_v40 = vor.u32 %v650_v34, %v487_v35  ;;  %v684_v42 = vld [vmem:[%s892_s3 + $0x28] sm:$0xff] }
   0xd   :  { %v494_v41 = vor.u32 %v653_v38, %v493_v37  ;;  %v683_v43 = vld [vmem:[%s892_s3 + $0x20] sm:$0xff]  ;;  %v682_v44 = vld [vmem:[%s892_s3 + $0x18] sm:$0xff]  ;;  %v681_v45 = vld [vmem:[%s892_s3 + $0x10] sm:$0xff] }
   0xe   :  { %261 = vmatpush.bf16.msra.mxu0 %v658_v13  ;;  %v680_v46 = vld [vmem:[%s892_s3 + $0x8] sm:$0xff]  ;;  %v679_v47 = vld [vmem:[%s892_s3] sm:$0xff]  ;;  %v689_v9 = vld [vmem:[%s895_s5 + $0x18] sm:$0xff] }
   0xf   :  { %275 = vmatpush.bf16.msra.mxu1 %v666_v14  ;;  %390 = vmatpush.bf16.msrb.mxu3 %v685_v23  ;;  %v416_v48 = vld [vmem:[%s895_s5 + $0x28] sm:$0x3]  ;;  %v690_v52 = vld [vmem:[%s895_s5 + $0x20] sm:$0xff]  ;;  %v688_v10 = vld [vmem:[%s895_s5 + $0x10] sm:$0xff] }
  0x10   :  { %289 = vmatpush.bf16.msra.mxu2 %v674_v15  ;;  %v442_v49 = vunpack.c.l.b16 %v416_v48  ;;  %v691_v53 = vld [vmem:[%s893_s2] ss:$0 sm:$0xff]  ;;  %v687_v11 = vld [vmem:[%s895_s5 + $0x8] sm:$0xff] }
  0x11   :  { %v686_v12 = vld [vmem:[%s895_s5] sm:$0xff] }
  0x12   :  { %262 = vmatpush.bf16.msra.mxu0 %v657_v18  ;;  %v448_v50 = vpack.c.b16 %v442_v49, %v442_v49  ;;  %v692_v14 = vld [vmem:[%s894_s4] ss:$0 sm:$0xff] }
  0x13   :  { %276 = vmatpush.bf16.msra.mxu1 %v665_v19  ;;  %391 = vmatpush.bf16.msrb.mxu3 %v684_v42 }
  0x14   :  { %290 = vmatpush.bf16.msra.mxu2 %v673_v21  ;;  %v460_v51 = vsel %vm458_vm2, %v448_v50, 0  ;;  %v693_v21 = vld [vmem:[%s896_s6] ss:$0 sm:$0xff] }
  0x16   :  { %263 = vmatpush.bf16.msra.mxu0 %v656_v24 }
  0x17   :  { %277 = vmatpush.bf16.msra.mxu1 %v664_v25  ;;  %392 = vmatpush.bf16.msrb.mxu3 %v683_v43 }
  0x18   :  { %291 = vmatpush.bf16.msra.mxu2 %v672_v26 }
  0x1a   :  { %264 = vmatpush.bf16.msra.mxu0 %v655_v27 }
  0x1b   :  { %278 = vmatpush.bf16.msra.mxu1 %v663_v28  ;;  %393 = vmatpush.bf16.msrb.mxu3 %v682_v44 }
  0x1c   :  { %292 = vmatpush.bf16.msra.mxu2 %v671_v29 }
  0x1e   :  { %265 = vmatpush.bf16.msra.mxu0 %v654_v30 }
  0x1f   :  { %279 = vmatpush.bf16.msra.mxu1 %v662_v31  ;;  %394 = vmatpush.bf16.msrb.mxu3 %v681_v45 }
  0x20   :  { %293 = vmatpush.bf16.msra.mxu2 %v670_v36 }
  0x21   :  { %266 = vmatmul.bf16.vlgmr.msra.gmra.mxu0 %v486_v39 }
  0x22   :  { %280 = vmatmul.bf16.vlgmr.msra.gmra.mxu1 %v490_v40  ;;  %464 = vmatpush.bf16.msrb.mxu0 %v460_v51 }
  0x23   :  { %294 = vmatmul.bf16.vlgmr.msra.gmra.mxu2 %v494_v41  ;;  %395 = vmatpush.bf16.msrb.mxu3 %v680_v46 }
  0x26   :  { %465 = vmatpush.bf16.msrb.mxu0 %v690_v52 }
  0x27   :  { %396 = vmatpush.bf16.msrb.mxu3 %v679_v47 }
  0x2a   :  { %466 = vmatpush.bf16.msrb.mxu0 %v689_v9 }
  0x2e   :  { %467 = vmatpush.bf16.msrb.mxu0 %v688_v10 }
  0x32   :  { %468 = vmatpush.bf16.msrb.mxu0 %v687_v11 }
  0x36   :  { %469 = vmatpush.bf16.msrb.mxu0 %v686_v12 }
  0x8b   :  { %v309_v57 = vpop.f32.mrf.mxu3 }
  0x93   :  { %v311_v4 = vpop.f32.mrf.mxu3 }
  0x9e   :  { %v267_v54 = vpop.f32.mrf.mxu0 }
  0x9f   :  { %v281_v55 = vpop.f32.mrf.mxu1  ;;  %v268_v56 = vadd.f32 %v691_v53, %v267_v54 }
  0xa1   :  { %v282_v59 = vadd.f32 %v281_v55, %v268_v56 }
  0xa6   :  { %v295_v58 = vpop.f32.mrf.mxu2  ;;  %v269_v60 = vpop.f32.mrf.mxu0 }
  0xa7   :  { %v270_v61 = vadd.f32 %v691_v53, %v269_v60  ;;  %v296_v62 = vadd.f32 %v295_v58, %v282_v59  ;;  %v283_v63 = vpop.f32.mrf.mxu1 }
  0xa9   :  { %v284_v0 = vadd.f32 %v283_v63, %v270_v61  ;;  %v310_v2 = vadd.f32 %v309_v57, %v296_v62 }
  0xab   :  { %v314_v6 = vmax.f32 %v310_v2, 0.0 }
  0xae   :  { %v297_v1 = vpop.f32.mrf.mxu2 }
  0xaf   :  { %v298_v3 = vadd.f32 %v297_v1, %v284_v0 }
  0xb1   :  { %v312_v5 = vadd.f32 %v311_v4, %v298_v3 }
  0xb3   :  { %v315_v7 = vmax.f32 %v312_v5, 0.0 }
  0xb5   :  { %v316_v8 = vpack.c.bf16 %v315_v7, %v314_v6 }
  0xb7   :  { %628 = vmatmul.msk.bf16.vlgmr.msrb.gmra.mxu3 %vm381_vm3, %v316_v8 }
 0x13a   :  { %v398_v13 = vpop.f32.mrf.mxu3 }
 0x13b   :  { %v399_v15 = vadd.f32 %v692_v14, %v398_v13 }
 0x13d   :  { %v403_v18 = vmax.f32 %v399_v15, 0.0 }
 0x142   :  { %v400_v16 = vpop.f32.mrf.mxu3 }
 0x143   :  { %v401_v17 = vadd.f32 %v692_v14, %v400_v16 }
 0x145   :  { %v404_v19 = vmax.f32 %v401_v17, 0.0 }
 0x147   :  { %v405_v20 = vpack.c.bf16 %v404_v19, %v403_v18 }
 0x149   :  { %649 = vmatmul.msk.bf16.vlgmr.msrb.gmra.mxu0 %vm454_vm4, %v405_v20 }
 0x1c6   :  { %v471_v22 = vpop.f32.mrf.mxu0 }
 0x1c7   :  { %v472_v23 = vadd.f32 %v693_v21, %v471_v22 }
 0x1c9   :  { %477 = vst.msk [vmem:[%s897_s7] sm:$0xff] %vm476_vm5, %v472_v23 }
 0x1ce   :  { %v473_v24 = vpop.f32.mrf.mxu0 }
 0x1cf   :  { %v474_v25 = vadd.f32 %v693_v21, %v473_v24 }
 0x1d1   :  { %478 = vst.msk [vmem:[%s897_s7 + $0x8] sm:$0xff] %vm476_vm5, %v474_v25 }

</bundles_post_ra>
